<compile_context>
chip_gen: v5e
topology: v5e:2x2
jax: 0.10.0
libtpu: 0.0.40
codegen_flags: <defaults>
</compile_context>

<pallas_src>
import math

import jax
import jax.numpy as jnp
from jax import lax
from jax.experimental import pallas as pl
from jax.experimental.pallas import tpu as pltpu


_ALL = ("1h", "2h", "3h", "4h", "1v", "2v", "3v", "4v")
_SINGLE = ("1h", "2h", "4h", "1v", "2v", "4v")   # convs with a private input
# "3h"/"3v" share the input `fuse` and are paired into one 2*WC-lane matmul.


# ------------------------------ Pallas kernel -------------------------------


def _make_cim_kernel(H, WC):
    def kernel(left_ref, down_ref, w6_ref, b6_ref, wp_ref, bp_ref,
               oh_ref, ov_ref):
        M = left_ref.shape[0]                                  # TB * H rows
        row = lax.broadcasted_iota(jnp.int32, (M, WC), 0) % H
        m_top = (row != 0).astype(jnp.float32)                 # zero x[h-1] at h == 0
        m_bot = (row != H - 1).astype(jnp.float32)             # zero x[h+1] at h == H-1

        def conv3x3(x, w_of_ky, bias):
            # y[h] = x[h-1] @ W0 + x[h] @ W1 + x[h+1] @ W2
            # (kx shifts + W zero-padding live inside W_ky; H zero-padding is
            #  the roll + boundary-row mask; BN scale folded into W_ky.)
            xm1 = pltpu.roll(x, shift=1, axis=0) * m_top       # x[h-1]
            xp1 = pltpu.roll(x, shift=M - 1, axis=0) * m_bot   # x[h+1]
            y = jnp.dot(xm1.astype(jnp.bfloat16), w_of_ky(0),
                        preferred_element_type=jnp.float32)
            y = y + jnp.dot(x.astype(jnp.bfloat16), w_of_ky(1),
                            preferred_element_type=jnp.float32)
            y = y + jnp.dot(xp1.astype(jnp.bfloat16), w_of_ky(2),
                            preferred_element_type=jnp.float32)
            return jnp.maximum(y + bias, 0.0)                  # folded bias + ReLU

        def cbr(i, x):
            return conv3x3(x, lambda k: w6_ref[i, k], b6_ref[i])

        left = left_ref[...]   # (M, WC) f32
        down = down_ref[...]   # (M, WC) f32

        out1h = cbr(0, left)                 # conv1h + bn1h + relu
        out2h = cbr(1, out1h)                # conv2h + bn2h + relu
        out1v = cbr(3, down)                 # conv1v + bn1v + relu
        out2v = cbr(4, out1v)                # conv2v + bn2v + relu
        fuse = out2h * out2v

        # conv3h & conv3v paired: one (M, 3WC)-equivalent conv with a
        # 2*WC-lane output, split afterwards.  Residuals added AFTER ReLU
        # (matches the PyTorch ordering: relu(bn(conv(fuse))) + out1*).
        y3 = conv3x3(fuse, lambda k: wp_ref[k], bp_ref[...])   # (M, 2*WC)
        out3h = y3[:, :WC] + out1h
        out3v = y3[:, WC:] + out1v

        oh_ref[...] = cbr(2, out3h)          # conv4h + bn4h + relu
        ov_ref[...] = cbr(5, out3v)          # conv4v + bn4v + relu

    return kernel


def _pick_tb(N, H, WC):
    """Batch elements folded per grid step (maximize matmul M within VMEM)."""
    # ~12 live (M, WC) f32 slabs in the kernel; keep them under ~8 MiB.
    max_rows = max(H, (8 * 1024 * 1024) // (12 * WC * 4))
    tb = max(1, min(N, max_rows // H))
    while N % tb:
        tb -= 1
    return tb


def _make_cim_call(N, H, WC, TB):
    M = TB * H
    act = pl.BlockSpec((M, WC), lambda i: (i, 0))

    def full(*shape):
        return pl.BlockSpec(shape, lambda i, _s=shape: tuple(0 for _ in _s))

    flops = 8 * 2 * (N * H) * (3 * WC) * WC
    bytes_accessed = (4 * N * H * WC * 4                           # 2 in + 2 out (f32)
                      + 2 * (6 * 3 * WC * WC + 3 * WC * 2 * WC)    # bf16 weights
                      + 4 * (6 * WC + 2 * WC))                     # f32 biases

    return pl.pallas_call(
        _make_cim_kernel(H, WC),
        out_shape=(jax.ShapeDtypeStruct((N * H, WC), jnp.float32),
                   jax.ShapeDtypeStruct((N * H, WC), jnp.float32)),
        grid=(N // TB,),
        in_specs=[
            act,                         # left  (N*H, WC) f32
            act,                         # down  (N*H, WC) f32
            full(6, 3, WC, WC),          # ky-split banded weights, bf16
            full(6, 1, WC),              # folded conv+BN biases, f32
            full(3, WC, 2 * WC),         # paired 3h|3v weights, bf16
            full(1, 2 * WC),             # paired 3h|3v biases, f32
        ],
        out_specs=(act, act),
        compiler_params=pltpu.CompilerParams(
            dimension_semantics=("parallel",)),
        cost_estimate=pl.CostEstimate(flops=flops, transcendentals=0,
                                      bytes_accessed=bytes_accessed),
    )


# --------------------------- parameter construction --------------------------


def _init_block(key, C, W):
    """Deterministic params for one Conv2d(C,C,3,3,bias=True)+BN(C) block."""
    k = jax.random.split(key, 6)
    w = jax.random.normal(k[0], (C, C, 3, 3), jnp.float32) / (3.0 * math.sqrt(C))
    b_conv = 0.1 * jax.random.normal(k[1], (C,), jnp.float32)
    gamma = 1.0 + 0.1 * jax.random.normal(k[2], (C,), jnp.float32)
    beta = 0.1 * jax.random.normal(k[3], (C,), jnp.float32)
    r_mean = 0.1 * jax.random.normal(k[4], (C,), jnp.float32)
    r_var = 0.5 + jnp.abs(jax.random.normal(k[5], (C,), jnp.float32))
    eps = 1e-5
    scale = gamma / jnp.sqrt(r_var + eps)
    bias = (b_conv - r_mean) * scale + beta

    # PyTorch (Cout,Cin,ky,kx) -> HWIO (ky,kx,ci,co); fold BN scale into weights.
    w_hwio = jnp.transpose(w, (2, 3, 1, 0))
    w_s = w_hwio * scale[None, None, None, :]

    # ky-split block-banded operators for the lane-dense (rows, W*C) layout:
    #   W_ky[w*C + ci, w'*C + co] = K[ky, kx, ci, co]  where w = w' + kx - 1,
    # i.e. the kx shifts and W-direction zero padding are absorbed per ky.
    WC = W * C
    w_ky = []
    for ky in range(3):
        blk = jnp.zeros((WC, WC), jnp.float32)
        for kx in range(3):
            blk = blk + jnp.kron(jnp.eye(W, k=1 - kx, dtype=jnp.float32),
                                 w_s[ky, kx])
        w_ky.append(blk)

    return {"w_ky": jnp.stack(w_ky, axis=0),   # (3, WC, WC) f32 (bf16-cast later)
            "bias_wc": jnp.tile(bias, W),      # (WC,) per-lane folded bias
            "w_folded_hwio": w_s,              # for the pure-JAX reference
            "bias": bias}


def init_cim_params(key, C, W):
    keys = jax.random.split(key, len(_ALL))
    return {n: _init_block(k, C, W) for n, k in zip(_ALL, keys)}


# -------------------------------- CIM forward --------------------------------


def cim_forward(left_nchw, down_nchw, params):
    """Pallas implementation of CIM.forward; inputs/outputs in NCHW."""
    N, C, H, W = left_nchw.shape
    WC = W * C
    # TODO(synk): NCHW<->NHWC layout plumbing stays in the XLA wrapper; at
    #             production sizes keep the surrounding network NHWC to drop it.
    left = jnp.transpose(left_nchw, (0, 2, 3, 1)).astype(jnp.float32)
    down = jnp.transpose(down_nchw, (0, 2, 3, 1)).astype(jnp.float32)
    if down.shape[1:3] != (H, W):
        # TODO(synk): jax.image.resize 'bilinear' ~ F.interpolate(align_corners=False);
        #             minor sub-pixel differences vs PyTorch are possible.
        down = jax.image.resize(
            down, (down.shape[0], H, W, down.shape[3]), method="bilinear")

    w6 = jnp.stack([params[n]["w_ky"] for n in _SINGLE]).astype(jnp.bfloat16)
    b6 = jnp.stack([params[n]["bias_wc"] for n in _SINGLE])[:, None, :]
    wp = jnp.concatenate([params["3h"]["w_ky"], params["3v"]["w_ky"]],
                         axis=-1).astype(jnp.bfloat16)          # (3, WC, 2WC)
    bp = jnp.concatenate([params["3h"]["bias_wc"],
                          params["3v"]["bias_wc"]])[None, :]    # (1, 2WC)

    TB = _pick_tb(N, H, WC)
    f = _make_cim_call(N, H, WC, TB)
    o4h, o4v = f(left.reshape(N * H, WC), down.reshape(N * H, WC),
                 w6, b6, wp, bp)

    o4h = jnp.transpose(o4h.reshape(N, H, W, C), (0, 3, 1, 2))
    o4v = jnp.transpose(o4v.reshape(N, H, W, C), (0, 3, 1, 2))
    return o4h, o4v


# ----------------------------- pure-JAX reference -----------------------------


def _ref_cbr(x, p, res=None):
    y = lax.conv_general_dilated(
        x, p["w_folded_hwio"], window_strides=(1, 1), padding="SAME",
        dimension_numbers=("NHWC", "HWIO", "NHWC"),
        precision=lax.Precision.HIGHEST,
        preferred_element_type=jnp.float32)
    y = jnp.maximum(y + p["bias"], 0.0)
    if res is not None:
        y = y + res
    return y


def cim_forward_ref(left_nchw, down_nchw, params):
    left = jnp.transpose(left_nchw, (0, 2, 3, 1)).astype(jnp.float32)
    down = jnp.transpose(down_nchw, (0, 2, 3, 1)).astype(jnp.float32)
    out1h = _ref_cbr(left, params["1h"])
    out2h = _ref_cbr(out1h, params["2h"])
    out1v = _ref_cbr(down, params["1v"])
    out2v = _ref_cbr(out1v, params["2v"])
    fuse = out2h * out2v
    out3h = _ref_cbr(fuse, params["3h"], res=out1h)
    out4h = _ref_cbr(out3h, params["4h"])
    out3v = _ref_cbr(fuse, params["3v"], res=out1v)
    out4v = _ref_cbr(out3v, params["4v"])
    return (jnp.transpose(out4h, (0, 3, 1, 2)),
            jnp.transpose(out4v, (0, 3, 1, 2)))


# ------------------------------------ main ------------------------------------

if __name__ == "__main__":
    N, C, H, W = 2, 8, 16, 16
    root = jax.random.PRNGKey(0)
    k_left, k_down, k_par = jax.random.split(root, 3)
    left = jax.random.normal(k_left, (N, C, H, W), jnp.float32)
    down = jax.random.normal(k_down, (N, C, H, W), jnp.float32)
    params = init_cim_params(k_par, C, W)

    out4h, out4v = jax.jit(cim_forward)(left, down, params)
    jax.block_until_ready((out4h, out4v))

    # Correctness check against a full-precision pure-JAX reference.
    # (bf16 weights/LHS with f32 accumulation -> scaled tolerance.)
    ref4h, ref4v = cim_forward_ref(left, down, params)
    assert bool(jnp.all(jnp.isfinite(out4h))) and bool(jnp.all(jnp.isfinite(out4v)))
    err_h = float(jnp.max(jnp.abs(out4h - ref4h)))
    err_v = float(jnp.max(jnp.abs(out4v - ref4v)))
    tol_h = 5e-2 * (1.0 + float(jnp.max(jnp.abs(ref4h))))
    tol_v = 5e-2 * (1.0 + float(jnp.max(jnp.abs(ref4v))))
    assert err_h < tol_h and err_v < tol_v, (err_h, tol_h, err_v, tol_v)

    print("KERNEL_OK")
</pallas_src>

<mosaic_0001>
module attributes {stable_mosaic.version = 11 : i64} {
  func.func @kernel(%arg0: i32, %arg1: memref<32x128xf32, #tpu.memory_space<vmem>>, %arg2: memref<32x128xf32, #tpu.memory_space<vmem>>, %arg3: memref<6x3x128x128xbf16, #tpu.memory_space<vmem>>, %arg4: memref<6x1x128xf32, #tpu.memory_space<vmem>>, %arg5: memref<3x128x256xbf16, #tpu.memory_space<vmem>>, %arg6: memref<1x256xf32, #tpu.memory_space<vmem>>, %arg7: memref<32x128xf32, #tpu.memory_space<vmem>>, %arg8: memref<32x128xf32, #tpu.memory_space<vmem>>) attributes {dimension_semantics = [#tpu.dimension_semantics<parallel>], iteration_bounds = array<i64: 1>, scalar_prefetch = 0 : i64, scratch_operands = 0 : i64, tpu.core_type = #tpu.core_type<tc>, window_params = [{transform_indices = @transform_0, window_bounds = array<i64: 32, 128>}, {transform_indices = @transform_1, window_bounds = array<i64: 32, 128>}, {pipeline_mode = #tpu.pipeline_mode<synchronous>, transform_indices = @transform_2, window_bounds = array<i64: 6, 3, 128, 128>}, {pipeline_mode = #tpu.pipeline_mode<synchronous>, transform_indices = @transform_3, window_bounds = array<i64: 6, 1, 128>}, {pipeline_mode = #tpu.pipeline_mode<synchronous>, transform_indices = @transform_4, window_bounds = array<i64: 3, 128, 256>}, {pipeline_mode = #tpu.pipeline_mode<synchronous>, transform_indices = @transform_5, window_bounds = array<i64: 1, 256>}, {transform_indices = @transform_6, window_bounds = array<i64: 32, 128>}, {transform_indices = @transform_7, window_bounds = array<i64: 32, 128>}]} {
    %0 = tpu.iota {dimensions = array<i32: 0>} : vector<32x128xi32>
    %c16_i32 = arith.constant 16 : i32
    %c0_i32 = arith.constant 0 : i32
    %1 = arith.cmpi eq, %c16_i32, %c0_i32 : i32
    %c1_i32 = arith.constant 1 : i32
    %2 = arith.select %1, %c1_i32, %c16_i32 : i32
    %3 = vector.broadcast %2 : i32 to vector<32x128xi32>
    %4 = arith.remsi %0, %3 : vector<32x128xi32>
    %c0_i32_0 = arith.constant 0 : i32
    %5 = vector.broadcast %c0_i32_0 : i32 to vector<32x128xi32>
    %6 = arith.cmpi ne, %4, %5 : vector<32x128xi32>
    %c0_i32_1 = arith.constant 0 : i32
    %7 = vector.broadcast %c0_i32_1 : i32 to vector<32x128xi32>
    %8 = arith.cmpi slt, %4, %7 : vector<32x128xi32>
    %c0_i32_2 = arith.constant 0 : i32
    %9 = arith.cmpi slt, %2, %c0_i32_2 : i32
    %10 = vector.broadcast %9 : i1 to vector<32x128xi1>
    %11 = vector.broadcast %10 : vector<32x128xi1> to vector<32x128xi1>
    %12 = arith.xori %8, %11 : vector<32x128xi1>
    %13 = arith.andi %12, %6 : vector<32x128xi1>
    %14 = vector.broadcast %2 : i32 to vector<32x128xi32>
    %15 = arith.addi %4, %14 : vector<32x128xi32>
    %16 = arith.select %13, %15, %4 : vector<32x128xi1>, vector<32x128xi32>
    %c0_i32_3 = arith.constant 0 : i32
    %17 = vector.broadcast %c0_i32_3 : i32 to vector<32x128xi32>
    %18 = arith.cmpi ne, %16, %17 : vector<32x128xi32>
    %19 = arith.extui %18 : vector<32x128xi1> to vector<32x128xi32>
    %20 = arith.sitofp %19 : vector<32x128xi32> to vector<32x128xf32>
    %c15_i32 = arith.constant 15 : i32
    %21 = vector.broadcast %c15_i32 : i32 to vector<32x128xi32>
    %22 = arith.cmpi ne, %16, %21 : vector<32x128xi32>
    %23 = arith.extui %22 : vector<32x128xi1> to vector<32x128xi32>
    %24 = arith.sitofp %23 : vector<32x128xi32> to vector<32x128xf32>
    %c0 = arith.constant 0 : index
    %c0_4 = arith.constant 0 : index
    %25 = vector.load %arg1[%c0, %c0_4] : memref<32x128xf32, #tpu.memory_space<vmem>>, vector<32x128xf32>
    %c0_5 = arith.constant 0 : index
    %c0_6 = arith.constant 0 : index
    %26 = vector.load %arg2[%c0_5, %c0_6] : memref<32x128xf32, #tpu.memory_space<vmem>>, vector<32x128xf32>
    %c0_7 = arith.constant 0 : index
    %c0_8 = arith.constant 0 : index
    %c0_9 = arith.constant 0 : index
    %27 = vector.load %arg4[%c0_7, %c0_8, %c0_9] : memref<6x1x128xf32, #tpu.memory_space<vmem>>, vector<1x1x128xf32>
    %28 = vector.shape_cast %27 : vector<1x1x128xf32> to vector<1x128xf32>
    %c1_i32_10 = arith.constant 1 : i32
    %29 = tpu.dynamic_rotate %25 by %c1_i32_10 dim 0 : vector<32x128xf32>, i32 -> vector<32x128xf32>
    %30 = arith.mulf %29, %20 : vector<32x128xf32>
    %c31_i32 = arith.constant 31 : i32
    %31 = tpu.dynamic_rotate %25 by %c31_i32 dim 0 : vector<32x128xf32>, i32 -> vector<32x128xf32>
    %32 = arith.mulf %31, %24 : vector<32x128xf32>
    %33 = arith.truncf %30 : vector<32x128xf32> to vector<32x128xbf16>
    %c0_11 = arith.constant 0 : index
    %c0_12 = arith.constant 0 : index
    %c0_13 = arith.constant 0 : index
    %c0_14 = arith.constant 0 : index
    %34 = vector.load %arg3[%c0_11, %c0_12, %c0_13, %c0_14] : memref<6x3x128x128xbf16, #tpu.memory_space<vmem>>, vector<1x1x128x128xbf16>
    %35 = vector.shape_cast %34 : vector<1x1x128x128xbf16> to vector<128x128xbf16>
    %cst = arith.constant dense<0.000000e+00> : vector<32x128xf32>
    %36 = tpu.matmul %33, %35, %cst {dimension_numbers = #tpu.dot_dimension_numbers<[1], [0], [0], [1], [0, 0, 1, 1], [], []>} : vector<32x128xbf16>, vector<128x128xbf16>, vector<32x128xf32> -> vector<32x128xf32>
    %37 = arith.truncf %25 : vector<32x128xf32> to vector<32x128xbf16>
    %c0_15 = arith.constant 0 : index
    %c1 = arith.constant 1 : index
    %c0_16 = arith.constant 0 : index
    %c0_17 = arith.constant 0 : index
    %38 = vector.load %arg3[%c0_15, %c1, %c0_16, %c0_17] : memref<6x3x128x128xbf16, #tpu.memory_space<vmem>>, vector<1x1x128x128xbf16>
    %39 = vector.shape_cast %38 : vector<1x1x128x128xbf16> to vector<128x128xbf16>
    %cst_18 = arith.constant dense<0.000000e+00> : vector<32x128xf32>
    %40 = tpu.matmul %37, %39, %cst_18 {dimension_numbers = #tpu.dot_dimension_numbers<[1], [0], [0], [1], [0, 0, 1, 1], [], []>} : vector<32x128xbf16>, vector<128x128xbf16>, vector<32x128xf32> -> vector<32x128xf32>
    %41 = arith.addf %36, %40 : vector<32x128xf32>
    %42 = arith.truncf %32 : vector<32x128xf32> to vector<32x128xbf16>
    %c0_19 = arith.constant 0 : index
    %c2 = arith.constant 2 : index
    %c0_20 = arith.constant 0 : index
    %c0_21 = arith.constant 0 : index
    %43 = vector.load %arg3[%c0_19, %c2, %c0_20, %c0_21] : memref<6x3x128x128xbf16, #tpu.memory_space<vmem>>, vector<1x1x128x128xbf16>
    %44 = vector.shape_cast %43 : vector<1x1x128x128xbf16> to vector<128x128xbf16>
    %cst_22 = arith.constant dense<0.000000e+00> : vector<32x128xf32>
    %45 = tpu.matmul %42, %44, %cst_22 {dimension_numbers = #tpu.dot_dimension_numbers<[1], [0], [0], [1], [0, 0, 1, 1], [], []>} : vector<32x128xbf16>, vector<128x128xbf16>, vector<32x128xf32> -> vector<32x128xf32>
    %46 = arith.addf %41, %45 : vector<32x128xf32>
    %47 = vector.broadcast %28 : vector<1x128xf32> to vector<32x128xf32>
    %48 = arith.addf %46, %47 : vector<32x128xf32>
    %cst_23 = arith.constant 0.000000e+00 : f32
    %49 = vector.broadcast %cst_23 : f32 to vector<32x128xf32>
    %50 = arith.maximumf %48, %49 : vector<32x128xf32>
    %c1_24 = arith.constant 1 : index
    %c0_25 = arith.constant 0 : index
    %c0_26 = arith.constant 0 : index
    %51 = vector.load %arg4[%c1_24, %c0_25, %c0_26] : memref<6x1x128xf32, #tpu.memory_space<vmem>>, vector<1x1x128xf32>
    %52 = vector.shape_cast %51 : vector<1x1x128xf32> to vector<1x128xf32>
    %c1_i32_27 = arith.constant 1 : i32
    %53 = tpu.dynamic_rotate %50 by %c1_i32_27 dim 0 : vector<32x128xf32>, i32 -> vector<32x128xf32>
    %54 = arith.mulf %53, %20 : vector<32x128xf32>
    %c31_i32_28 = arith.constant 31 : i32
    %55 = tpu.dynamic_rotate %50 by %c31_i32_28 dim 0 : vector<32x128xf32>, i32 -> vector<32x128xf32>
    %56 = arith.mulf %55, %24 : vector<32x128xf32>
    %57 = arith.truncf %54 : vector<32x128xf32> to vector<32x128xbf16>
    %c1_29 = arith.constant 1 : index
    %c0_30 = arith.constant 0 : index
    %c0_31 = arith.constant 0 : index
    %c0_32 = arith.constant 0 : index
    %58 = vector.load %arg3[%c1_29, %c0_30, %c0_31, %c0_32] : memref<6x3x128x128xbf16, #tpu.memory_space<vmem>>, vector<1x1x128x128xbf16>
    %59 = vector.shape_cast %58 : vector<1x1x128x128xbf16> to vector<128x128xbf16>
    %cst_33 = arith.constant dense<0.000000e+00> : vector<32x128xf32>
    %60 = tpu.matmul %57, %59, %cst_33 {dimension_numbers = #tpu.dot_dimension_numbers<[1], [0], [0], [1], [0, 0, 1, 1], [], []>} : vector<32x128xbf16>, vector<128x128xbf16>, vector<32x128xf32> -> vector<32x128xf32>
    %61 = arith.truncf %50 : vector<32x128xf32> to vector<32x128xbf16>
    %c1_34 = arith.constant 1 : index
    %c1_35 = arith.constant 1 : index
    %c0_36 = arith.constant 0 : index
    %c0_37 = arith.constant 0 : index
    %62 = vector.load %arg3[%c1_34, %c1_35, %c0_36, %c0_37] : memref<6x3x128x128xbf16, #tpu.memory_space<vmem>>, vector<1x1x128x128xbf16>
    %63 = vector.shape_cast %62 : vector<1x1x128x128xbf16> to vector<128x128xbf16>
    %cst_38 = arith.constant dense<0.000000e+00> : vector<32x128xf32>
    %64 = tpu.matmul %61, %63, %cst_38 {dimension_numbers = #tpu.dot_dimension_numbers<[1], [0], [0], [1], [0, 0, 1, 1], [], []>} : vector<32x128xbf16>, vector<128x128xbf16>, vector<32x128xf32> -> vector<32x128xf32>
    %65 = arith.addf %60, %64 : vector<32x128xf32>
    %66 = arith.truncf %56 : vector<32x128xf32> to vector<32x128xbf16>
    %c1_39 = arith.constant 1 : index
    %c2_40 = arith.constant 2 : index
    %c0_41 = arith.constant 0 : index
    %c0_42 = arith.constant 0 : index
    %67 = vector.load %arg3[%c1_39, %c2_40, %c0_41, %c0_42] : memref<6x3x128x128xbf16, #tpu.memory_space<vmem>>, vector<1x1x128x128xbf16>
    %68 = vector.shape_cast %67 : vector<1x1x128x128xbf16> to vector<128x128xbf16>
    %cst_43 = arith.constant dense<0.000000e+00> : vector<32x128xf32>
    %69 = tpu.matmul %66, %68, %cst_43 {dimension_numbers = #tpu.dot_dimension_numbers<[1], [0], [0], [1], [0, 0, 1, 1], [], []>} : vector<32x128xbf16>, vector<128x128xbf16>, vector<32x128xf32> -> vector<32x128xf32>
    %70 = arith.addf %65, %69 : vector<32x128xf32>
    %71 = vector.broadcast %52 : vector<1x128xf32> to vector<32x128xf32>
    %72 = arith.addf %70, %71 : vector<32x128xf32>
    %cst_44 = arith.constant 0.000000e+00 : f32
    %73 = vector.broadcast %cst_44 : f32 to vector<32x128xf32>
    %74 = arith.maximumf %72, %73 : vector<32x128xf32>
    %c3 = arith.constant 3 : index
    %c0_45 = arith.constant 0 : index
    %c0_46 = arith.constant 0 : index
    %75 = vector.load %arg4[%c3, %c0_45, %c0_46] : memref<6x1x128xf32, #tpu.memory_space<vmem>>, vector<1x1x128xf32>
    %76 = vector.shape_cast %75 : vector<1x1x128xf32> to vector<1x128xf32>
    %c1_i32_47 = arith.constant 1 : i32
    %77 = tpu.dynamic_rotate %26 by %c1_i32_47 dim 0 : vector<32x128xf32>, i32 -> vector<32x128xf32>
    %78 = arith.mulf %77, %20 : vector<32x128xf32>
    %c31_i32_48 = arith.constant 31 : i32
    %79 = tpu.dynamic_rotate %26 by %c31_i32_48 dim 0 : vector<32x128xf32>, i32 -> vector<32x128xf32>
    %80 = arith.mulf %79, %24 : vector<32x128xf32>
    %81 = arith.truncf %78 : vector<32x128xf32> to vector<32x128xbf16>
    %c3_49 = arith.constant 3 : index
    %c0_50 = arith.constant 0 : index
    %c0_51 = arith.constant 0 : index
    %c0_52 = arith.constant 0 : index
    %82 = vector.load %arg3[%c3_49, %c0_50, %c0_51, %c0_52] : memref<6x3x128x128xbf16, #tpu.memory_space<vmem>>, vector<1x1x128x128xbf16>
    %83 = vector.shape_cast %82 : vector<1x1x128x128xbf16> to vector<128x128xbf16>
    %cst_53 = arith.constant dense<0.000000e+00> : vector<32x128xf32>
    %84 = tpu.matmul %81, %83, %cst_53 {dimension_numbers = #tpu.dot_dimension_numbers<[1], [0], [0], [1], [0, 0, 1, 1], [], []>} : vector<32x128xbf16>, vector<128x128xbf16>, vector<32x128xf32> -> vector<32x128xf32>
    %85 = arith.truncf %26 : vector<32x128xf32> to vector<32x128xbf16>
    %c3_54 = arith.constant 3 : index
    %c1_55 = arith.constant 1 : index
    %c0_56 = arith.constant 0 : index
    %c0_57 = arith.constant 0 : index
    %86 = vector.load %arg3[%c3_54, %c1_55, %c0_56, %c0_57] : memref<6x3x128x128xbf16, #tpu.memory_space<vmem>>, vector<1x1x128x128xbf16>
    %87 = vector.shape_cast %86 : vector<1x1x128x128xbf16> to vector<128x128xbf16>
    %cst_58 = arith.constant dense<0.000000e+00> : vector<32x128xf32>
    %88 = tpu.matmul %85, %87, %cst_58 {dimension_numbers = #tpu.dot_dimension_numbers<[1], [0], [0], [1], [0, 0, 1, 1], [], []>} : vector<32x128xbf16>, vector<128x128xbf16>, vector<32x128xf32> -> vector<32x128xf32>
    %89 = arith.addf %84, %88 : vector<32x128xf32>
    %90 = arith.truncf %80 : vector<32x128xf32> to vector<32x128xbf16>
    %c3_59 = arith.constant 3 : index
    %c2_60 = arith.constant 2 : index
    %c0_61 = arith.constant 0 : index
    %c0_62 = arith.constant 0 : index
    %91 = vector.load %arg3[%c3_59, %c2_60, %c0_61, %c0_62] : memref<6x3x128x128xbf16, #tpu.memory_space<vmem>>, vector<1x1x128x128xbf16>
    %92 = vector.shape_cast %91 : vector<1x1x128x128xbf16> to vector<128x128xbf16>
    %cst_63 = arith.constant dense<0.000000e+00> : vector<32x128xf32>
    %93 = tpu.matmul %90, %92, %cst_63 {dimension_numbers = #tpu.dot_dimension_numbers<[1], [0], [0], [1], [0, 0, 1, 1], [], []>} : vector<32x128xbf16>, vector<128x128xbf16>, vector<32x128xf32> -> vector<32x128xf32>
    %94 = arith.addf %89, %93 : vector<32x128xf32>
    %95 = vector.broadcast %76 : vector<1x128xf32> to vector<32x128xf32>
    %96 = arith.addf %94, %95 : vector<32x128xf32>
    %cst_64 = arith.constant 0.000000e+00 : f32
    %97 = vector.broadcast %cst_64 : f32 to vector<32x128xf32>
    %98 = arith.maximumf %96, %97 : vector<32x128xf32>
    %c4 = arith.constant 4 : index
    %c0_65 = arith.constant 0 : index
    %c0_66 = arith.constant 0 : index
    %99 = vector.load %arg4[%c4, %c0_65, %c0_66] : memref<6x1x128xf32, #tpu.memory_space<vmem>>, vector<1x1x128xf32>
    %100 = vector.shape_cast %99 : vector<1x1x128xf32> to vector<1x128xf32>
    %c1_i32_67 = arith.constant 1 : i32
    %101 = tpu.dynamic_rotate %98 by %c1_i32_67 dim 0 : vector<32x128xf32>, i32 -> vector<32x128xf32>
    %102 = arith.mulf %101, %20 : vector<32x128xf32>
    %c31_i32_68 = arith.constant 31 : i32
    %103 = tpu.dynamic_rotate %98 by %c31_i32_68 dim 0 : vector<32x128xf32>, i32 -> vector<32x128xf32>
    %104 = arith.mulf %103, %24 : vector<32x128xf32>
    %105 = arith.truncf %102 : vector<32x128xf32> to vector<32x128xbf16>
    %c4_69 = arith.constant 4 : index
    %c0_70 = arith.constant 0 : index
    %c0_71 = arith.constant 0 : index
    %c0_72 = arith.constant 0 : index
    %106 = vector.load %arg3[%c4_69, %c0_70, %c0_71, %c0_72] : memref<6x3x128x128xbf16, #tpu.memory_space<vmem>>, vector<1x1x128x128xbf16>
    %107 = vector.shape_cast %106 : vector<1x1x128x128xbf16> to vector<128x128xbf16>
    %cst_73 = arith.constant dense<0.000000e+00> : vector<32x128xf32>
    %108 = tpu.matmul %105, %107, %cst_73 {dimension_numbers = #tpu.dot_dimension_numbers<[1], [0], [0], [1], [0, 0, 1, 1], [], []>} : vector<32x128xbf16>, vector<128x128xbf16>, vector<32x128xf32> -> vector<32x128xf32>
    %109 = arith.truncf %98 : vector<32x128xf32> to vector<32x128xbf16>
    %c4_74 = arith.constant 4 : index
    %c1_75 = arith.constant 1 : index
    %c0_76 = arith.constant 0 : index
    %c0_77 = arith.constant 0 : index
    %110 = vector.load %arg3[%c4_74, %c1_75, %c0_76, %c0_77] : memref<6x3x128x128xbf16, #tpu.memory_space<vmem>>, vector<1x1x128x128xbf16>
    %111 = vector.shape_cast %110 : vector<1x1x128x128xbf16> to vector<128x128xbf16>
    %cst_78 = arith.constant dense<0.000000e+00> : vector<32x128xf32>
    %112 = tpu.matmul %109, %111, %cst_78 {dimension_numbers = #tpu.dot_dimension_numbers<[1], [0], [0], [1], [0, 0, 1, 1], [], []>} : vector<32x128xbf16>, vector<128x128xbf16>, vector<32x128xf32> -> vector<32x128xf32>
    %113 = arith.addf %108, %112 : vector<32x128xf32>
    %114 = arith.truncf %104 : vector<32x128xf32> to vector<32x128xbf16>
    %c4_79 = arith.constant 4 : index
    %c2_80 = arith.constant 2 : index
    %c0_81 = arith.constant 0 : index
    %c0_82 = arith.constant 0 : index
    %115 = vector.load %arg3[%c4_79, %c2_80, %c0_81, %c0_82] : memref<6x3x128x128xbf16, #tpu.memory_space<vmem>>, vector<1x1x128x128xbf16>
    %116 = vector.shape_cast %115 : vector<1x1x128x128xbf16> to vector<128x128xbf16>
    %cst_83 = arith.constant dense<0.000000e+00> : vector<32x128xf32>
    %117 = tpu.matmul %114, %116, %cst_83 {dimension_numbers = #tpu.dot_dimension_numbers<[1], [0], [0], [1], [0, 0, 1, 1], [], []>} : vector<32x128xbf16>, vector<128x128xbf16>, vector<32x128xf32> -> vector<32x128xf32>
    %118 = arith.addf %113, %117 : vector<32x128xf32>
    %119 = vector.broadcast %100 : vector<1x128xf32> to vector<32x128xf32>
    %120 = arith.addf %118, %119 : vector<32x128xf32>
    %cst_84 = arith.constant 0.000000e+00 : f32
    %121 = vector.broadcast %cst_84 : f32 to vector<32x128xf32>
    %122 = arith.maximumf %120, %121 : vector<32x128xf32>
    %123 = arith.mulf %74, %122 : vector<32x128xf32>
    %c0_85 = arith.constant 0 : index
    %c0_86 = arith.constant 0 : index
    %124 = vector.load %arg6[%c0_85, %c0_86] : memref<1x256xf32, #tpu.memory_space<vmem>>, vector<1x256xf32>
    %c1_i32_87 = arith.constant 1 : i32
    %125 = tpu.dynamic_rotate %123 by %c1_i32_87 dim 0 : vector<32x128xf32>, i32 -> vector<32x128xf32>
    %126 = arith.mulf %125, %20 : vector<32x128xf32>
    %c31_i32_88 = arith.constant 31 : i32
    %127 = tpu.dynamic_rotate %123 by %c31_i32_88 dim 0 : vector<32x128xf32>, i32 -> vector<32x128xf32>
    %128 = arith.mulf %127, %24 : vector<32x128xf32>
    %129 = arith.truncf %126 : vector<32x128xf32> to vector<32x128xbf16>
    %c0_89 = arith.constant 0 : index
    %c0_90 = arith.constant 0 : index
    %c0_91 = arith.constant 0 : index
    %130 = vector.load %arg5[%c0_89, %c0_90, %c0_91] : memref<3x128x256xbf16, #tpu.memory_space<vmem>>, vector<1x128x256xbf16>
    %131 = vector.shape_cast %130 : vector<1x128x256xbf16> to vector<128x256xbf16>
    %cst_92 = arith.constant dense<0.000000e+00> : vector<32x256xf32>
    %132 = tpu.matmul %129, %131, %cst_92 {dimension_numbers = #tpu.dot_dimension_numbers<[1], [0], [0], [1], [0, 0, 1, 1], [], []>} : vector<32x128xbf16>, vector<128x256xbf16>, vector<32x256xf32> -> vector<32x256xf32>
    %133 = arith.truncf %123 : vector<32x128xf32> to vector<32x128xbf16>
    %c1_93 = arith.constant 1 : index
    %c0_94 = arith.constant 0 : index
    %c0_95 = arith.constant 0 : index
    %134 = vector.load %arg5[%c1_93, %c0_94, %c0_95] : memref<3x128x256xbf16, #tpu.memory_space<vmem>>, vector<1x128x256xbf16>
    %135 = vector.shape_cast %134 : vector<1x128x256xbf16> to vector<128x256xbf16>
    %cst_96 = arith.constant dense<0.000000e+00> : vector<32x256xf32>
    %136 = tpu.matmul %133, %135, %cst_96 {dimension_numbers = #tpu.dot_dimension_numbers<[1], [0], [0], [1], [0, 0, 1, 1], [], []>} : vector<32x128xbf16>, vector<128x256xbf16>, vector<32x256xf32> -> vector<32x256xf32>
    %137 = arith.addf %132, %136 : vector<32x256xf32>
    %138 = arith.truncf %128 : vector<32x128xf32> to vector<32x128xbf16>
    %c2_97 = arith.constant 2 : index
    %c0_98 = arith.constant 0 : index
    %c0_99 = arith.constant 0 : index
    %139 = vector.load %arg5[%c2_97, %c0_98, %c0_99] : memref<3x128x256xbf16, #tpu.memory_space<vmem>>, vector<1x128x256xbf16>
    %140 = vector.shape_cast %139 : vector<1x128x256xbf16> to vector<128x256xbf16>
    %cst_100 = arith.constant dense<0.000000e+00> : vector<32x256xf32>
    %141 = tpu.matmul %138, %140, %cst_100 {dimension_numbers = #tpu.dot_dimension_numbers<[1], [0], [0], [1], [0, 0, 1, 1], [], []>} : vector<32x128xbf16>, vector<128x256xbf16>, vector<32x256xf32> -> vector<32x256xf32>
    %142 = arith.addf %137, %141 : vector<32x256xf32>
    %143 = vector.broadcast %124 : vector<1x256xf32> to vector<32x256xf32>
    %144 = arith.addf %142, %143 : vector<32x256xf32>
    %cst_101 = arith.constant 0.000000e+00 : f32
    %145 = vector.broadcast %cst_101 : f32 to vector<32x256xf32>
    %146 = arith.maximumf %144, %145 : vector<32x256xf32>
    %147 = vector.extract_strided_slice %146 {offsets = [0, 0], sizes = [32, 128], strides = [1, 1]} : vector<32x256xf32> to vector<32x128xf32>
    %148 = arith.addf %147, %50 : vector<32x128xf32>
    %149 = vector.extract_strided_slice %146 {offsets = [0, 128], sizes = [32, 128], strides = [1, 1]} : vector<32x256xf32> to vector<32x128xf32>
    %150 = arith.addf %149, %98 : vector<32x128xf32>
    %c2_102 = arith.constant 2 : index
    %c0_103 = arith.constant 0 : index
    %c0_104 = arith.constant 0 : index
    %151 = vector.load %arg4[%c2_102, %c0_103, %c0_104] : memref<6x1x128xf32, #tpu.memory_space<vmem>>, vector<1x1x128xf32>
    %152 = vector.shape_cast %151 : vector<1x1x128xf32> to vector<1x128xf32>
    %c1_i32_105 = arith.constant 1 : i32
    %153 = tpu.dynamic_rotate %148 by %c1_i32_105 dim 0 : vector<32x128xf32>, i32 -> vector<32x128xf32>
    %154 = arith.mulf %153, %20 : vector<32x128xf32>
    %c31_i32_106 = arith.constant 31 : i32
    %155 = tpu.dynamic_rotate %148 by %c31_i32_106 dim 0 : vector<32x128xf32>, i32 -> vector<32x128xf32>
    %156 = arith.mulf %155, %24 : vector<32x128xf32>
    %157 = arith.truncf %154 : vector<32x128xf32> to vector<32x128xbf16>
    %c2_107 = arith.constant 2 : index
    %c0_108 = arith.constant 0 : index
    %c0_109 = arith.constant 0 : index
    %c0_110 = arith.constant 0 : index
    %158 = vector.load %arg3[%c2_107, %c0_108, %c0_109, %c0_110] : memref<6x3x128x128xbf16, #tpu.memory_space<vmem>>, vector<1x1x128x128xbf16>
    %159 = vector.shape_cast %158 : vector<1x1x128x128xbf16> to vector<128x128xbf16>
    %cst_111 = arith.constant dense<0.000000e+00> : vector<32x128xf32>
    %160 = tpu.matmul %157, %159, %cst_111 {dimension_numbers = #tpu.dot_dimension_numbers<[1], [0], [0], [1], [0, 0, 1, 1], [], []>} : vector<32x128xbf16>, vector<128x128xbf16>, vector<32x128xf32> -> vector<32x128xf32>
    %161 = arith.truncf %148 : vector<32x128xf32> to vector<32x128xbf16>
    %c2_112 = arith.constant 2 : index
    %c1_113 = arith.constant 1 : index
    %c0_114 = arith.constant 0 : index
    %c0_115 = arith.constant 0 : index
    %162 = vector.load %arg3[%c2_112, %c1_113, %c0_114, %c0_115] : memref<6x3x128x128xbf16, #tpu.memory_space<vmem>>, vector<1x1x128x128xbf16>
    %163 = vector.shape_cast %162 : vector<1x1x128x128xbf16> to vector<128x128xbf16>
    %cst_116 = arith.constant dense<0.000000e+00> : vector<32x128xf32>
    %164 = tpu.matmul %161, %163, %cst_116 {dimension_numbers = #tpu.dot_dimension_numbers<[1], [0], [0], [1], [0, 0, 1, 1], [], []>} : vector<32x128xbf16>, vector<128x128xbf16>, vector<32x128xf32> -> vector<32x128xf32>
    %165 = arith.addf %160, %164 : vector<32x128xf32>
    %166 = arith.truncf %156 : vector<32x128xf32> to vector<32x128xbf16>
    %c2_117 = arith.constant 2 : index
    %c2_118 = arith.constant 2 : index
    %c0_119 = arith.constant 0 : index
    %c0_120 = arith.constant 0 : index
    %167 = vector.load %arg3[%c2_117, %c2_118, %c0_119, %c0_120] : memref<6x3x128x128xbf16, #tpu.memory_space<vmem>>, vector<1x1x128x128xbf16>
    %168 = vector.shape_cast %167 : vector<1x1x128x128xbf16> to vector<128x128xbf16>
    %cst_121 = arith.constant dense<0.000000e+00> : vector<32x128xf32>
    %169 = tpu.matmul %166, %168, %cst_121 {dimension_numbers = #tpu.dot_dimension_numbers<[1], [0], [0], [1], [0, 0, 1, 1], [], []>} : vector<32x128xbf16>, vector<128x128xbf16>, vector<32x128xf32> -> vector<32x128xf32>
    %170 = arith.addf %165, %169 : vector<32x128xf32>
    %171 = vector.broadcast %152 : vector<1x128xf32> to vector<32x128xf32>
    %172 = arith.addf %170, %171 : vector<32x128xf32>
    %cst_122 = arith.constant 0.000000e+00 : f32
    %173 = vector.broadcast %cst_122 : f32 to vector<32x128xf32>
    %174 = arith.maximumf %172, %173 : vector<32x128xf32>
    %c0_123 = arith.constant 0 : index
    %c0_124 = arith.constant 0 : index
    %175 = vector.load %arg7[%c0_123, %c0_124] : memref<32x128xf32, #tpu.memory_space<vmem>>, vector<32x128xf32>
    tpu.vector_store %arg7[%c0_123, %c0_124], %174 {strides = array<i32>} : memref<32x128xf32, #tpu.memory_space<vmem>>, vector<32x128xf32>,
    %c5 = arith.constant 5 : index
    %c0_125 = arith.constant 0 : index
    %c0_126 = arith.constant 0 : index
    %176 = vector.load %arg4[%c5, %c0_125, %c0_126] : memref<6x1x128xf32, #tpu.memory_space<vmem>>, vector<1x1x128xf32>
    %177 = vector.shape_cast %176 : vector<1x1x128xf32> to vector<1x128xf32>
    %c1_i32_127 = arith.constant 1 : i32
    %178 = tpu.dynamic_rotate %150 by %c1_i32_127 dim 0 : vector<32x128xf32>, i32 -> vector<32x128xf32>
    %179 = arith.mulf %178, %20 : vector<32x128xf32>
    %c31_i32_128 = arith.constant 31 : i32
    %180 = tpu.dynamic_rotate %150 by %c31_i32_128 dim 0 : vector<32x128xf32>, i32 -> vector<32x128xf32>
    %181 = arith.mulf %180, %24 : vector<32x128xf32>
    %182 = arith.truncf %179 : vector<32x128xf32> to vector<32x128xbf16>
    %c5_129 = arith.constant 5 : index
    %c0_130 = arith.constant 0 : index
    %c0_131 = arith.constant 0 : index
    %c0_132 = arith.constant 0 : index
    %183 = vector.load %arg3[%c5_129, %c0_130, %c0_131, %c0_132] : memref<6x3x128x128xbf16, #tpu.memory_space<vmem>>, vector<1x1x128x128xbf16>
    %184 = vector.shape_cast %183 : vector<1x1x128x128xbf16> to vector<128x128xbf16>
    %cst_133 = arith.constant dense<0.000000e+00> : vector<32x128xf32>
    %185 = tpu.matmul %182, %184, %cst_133 {dimension_numbers = #tpu.dot_dimension_numbers<[1], [0], [0], [1], [0, 0, 1, 1], [], []>} : vector<32x128xbf16>, vector<128x128xbf16>, vector<32x128xf32> -> vector<32x128xf32>
    %186 = arith.truncf %150 : vector<32x128xf32> to vector<32x128xbf16>
    %c5_134 = arith.constant 5 : index
    %c1_135 = arith.constant 1 : index
    %c0_136 = arith.constant 0 : index
    %c0_137 = arith.constant 0 : index
    %187 = vector.load %arg3[%c5_134, %c1_135, %c0_136, %c0_137] : memref<6x3x128x128xbf16, #tpu.memory_space<vmem>>, vector<1x1x128x128xbf16>
    %188 = vector.shape_cast %187 : vector<1x1x128x128xbf16> to vector<128x128xbf16>
    %cst_138 = arith.constant dense<0.000000e+00> : vector<32x128xf32>
    %189 = tpu.matmul %186, %188, %cst_138 {dimension_numbers = #tpu.dot_dimension_numbers<[1], [0], [0], [1], [0, 0, 1, 1], [], []>} : vector<32x128xbf16>, vector<128x128xbf16>, vector<32x128xf32> -> vector<32x128xf32>
    %190 = arith.addf %185, %189 : vector<32x128xf32>
    %191 = arith.truncf %181 : vector<32x128xf32> to vector<32x128xbf16>
    %c5_139 = arith.constant 5 : index
    %c2_140 = arith.constant 2 : index
    %c0_141 = arith.constant 0 : index
    %c0_142 = arith.constant 0 : index
    %192 = vector.load %arg3[%c5_139, %c2_140, %c0_141, %c0_142] : memref<6x3x128x128xbf16, #tpu.memory_space<vmem>>, vector<1x1x128x128xbf16>
    %193 = vector.shape_cast %192 : vector<1x1x128x128xbf16> to vector<128x128xbf16>
    %cst_143 = arith.constant dense<0.000000e+00> : vector<32x128xf32>
    %194 = tpu.matmul %191, %193, %cst_143 {dimension_numbers = #tpu.dot_dimension_numbers<[1], [0], [0], [1], [0, 0, 1, 1], [], []>} : vector<32x128xbf16>, vector<128x128xbf16>, vector<32x128xf32> -> vector<32x128xf32>
    %195 = arith.addf %190, %194 : vector<32x128xf32>
    %196 = vector.broadcast %177 : vector<1x128xf32> to vector<32x128xf32>
    %197 = arith.addf %195, %196 : vector<32x128xf32>
    %cst_144 = arith.constant 0.000000e+00 : f32
    %198 = vector.broadcast %cst_144 : f32 to vector<32x128xf32>
    %199 = arith.maximumf %197, %198 : vector<32x128xf32>
    %c0_145 = arith.constant 0 : index
    %c0_146 = arith.constant 0 : index
    %200 = vector.load %arg8[%c0_145, %c0_146] : memref<32x128xf32, #tpu.memory_space<vmem>>, vector<32x128xf32>
    tpu.vector_store %arg8[%c0_145, %c0_146], %199 {strides = array<i32>} : memref<32x128xf32, #tpu.memory_space<vmem>>, vector<32x128xf32>,
    return
  }
  func.func @transform_0(%arg0: i32) -> (i32, i32) {
    %c0_i32 = arith.constant 0 : i32
    %c0_i32_0 = arith.constant 0 : i32
    return %arg0, %c0_i32 : i32, i32
  }
  func.func @transform_1(%arg0: i32) -> (i32, i32) {
    %c0_i32 = arith.constant 0 : i32
    %c0_i32_0 = arith.constant 0 : i32
    return %arg0, %c0_i32 : i32, i32
  }
  func.func @transform_2(%arg0: i32) -> (i32, i32, i32, i32) {
    %c0_i32 = arith.constant 0 : i32
    %c0_i32_0 = arith.constant 0 : i32
    %c0_i32_1 = arith.constant 0 : i32
    %c0_i32_2 = arith.constant 0 : i32
    %c0_i32_3 = arith.constant 0 : i32
    return %c0_i32, %c0_i32_0, %c0_i32_1, %c0_i32_2 : i32, i32, i32, i32
  }
  func.func @transform_3(%arg0: i32) -> (i32, i32, i32) {
    %c0_i32 = arith.constant 0 : i32
    %c0_i32_0 = arith.constant 0 : i32
    %c0_i32_1 = arith.constant 0 : i32
    %c0_i32_2 = arith.constant 0 : i32
    return %c0_i32, %c0_i32_0, %c0_i32_1 : i32, i32, i32
  }
  func.func @transform_4(%arg0: i32) -> (i32, i32, i32) {
    %c0_i32 = arith.constant 0 : i32
    %c0_i32_0 = arith.constant 0 : i32
    %c0_i32_1 = arith.constant 0 : i32
    %c0_i32_2 = arith.constant 0 : i32
    return %c0_i32, %c0_i32_0, %c0_i32_1 : i32, i32, i32
  }
  func.func @transform_5(%arg0: i32) -> (i32, i32) {
    %c0_i32 = arith.constant 0 : i32
    %c0_i32_0 = arith.constant 0 : i32
    %c0_i32_1 = arith.constant 0 : i32
    return %c0_i32, %c0_i32_0 : i32, i32
  }
  func.func @transform_6(%arg0: i32) -> (i32, i32) {
    %c0_i32 = arith.constant 0 : i32
    %c0_i32_0 = arith.constant 0 : i32
    return %arg0, %c0_i32 : i32, i32
  }
  func.func @transform_7(%arg0: i32) -> (i32, i32) {
    %c0_i32 = arith.constant 0 : i32
    %c0_i32_0 = arith.constant 0 : i32
    return %arg0, %c0_i32 : i32, i32
  }
}

</mosaic_0001>

<bundles_post_ra>
// kernel: cim_forward.1
= control target key start
LH: loop header
LB: loop body
LE: loop exit
PB: predicated region body
PF: predicated region fallthrough
CT: control target
= control target key end

     0   :  { %v25_v6 = vlaneseq  ;;  %v3676_v36 = vmov 0.0   ;;  %s4827_s2 = inlined_call_operand.vmem [shape: bf16[6,3,128,128], index: 2, kind: input, shape index: {}]   ;;  %s4828_s0 = inlined_call_operand.vmem [shape: f32[32,128], index: 0, kind: input, shape index: {}]   ;;  %s4829_s3 = inlined_call_operand.vmem [shape: f32[6,1,128], index: 3, kind: input, shape index: {}]   ;;  %s4830_s1 = inlined_call_operand.vmem [shape: f32[32,128], index: 1, kind: input, shape index: {}]   ;;  %s4831_s4 = inlined_call_operand.vmem [shape: bf16[3,128,256], index: 4, kind: input, shape index: {}]   ;;  %s4832_s5 = inlined_call_operand.vmem [shape: f32[1,256], index: 5, kind: input, shape index: {}]   ;;  %s4833_s6 = inlined_call_operand.vmem [shape: f32[32,128], index: 6, kind: output, shape index: {0}]   ;;  %s4834_s7 = inlined_call_operand.vmem [shape: f32[32,128], index: 7, kind: output, shape index: {1}]  }
   0x1   :  { %v3492_v0 = vld [vmem:[%s4827_s2 + $0x78] sm:$0xff]  ;;  %v3491_v3 = vld [vmem:[%s4827_s2 + $0x70] sm:$0xff]  ;;  %v3490_v7 = vld [vmem:[%s4827_s2 + $0x68] sm:$0xff] }
   0x2   :  { %v3484_v1 = vld [vmem:[%s4827_s2 + $0x38] sm:$0xff]  ;;  %222 = vmatpush.bf16.msra.mxu0 %v3492_v0  ;;  %v3483_v4 = vld [vmem:[%s4827_s2 + $0x30] sm:$0xff]  ;;  %v3482_v8 = vld [vmem:[%s4827_s2 + $0x28] sm:$0xff]  ;;  %v3744_v10 = vshrl.u32 %v25_v6, 7 }
   0x3   :  { %v3500_v2 = vld [vmem:[%s4827_s2 + $0xb8] sm:$0xff]  ;;  %289 = vmatpush.bf16.msra.mxu1 %v3484_v1  ;;  %v3499_v5 = vld [vmem:[%s4827_s2 + $0xb0] sm:$0xff]  ;;  %v3498_v9 = vld [vmem:[%s4827_s2 + $0xa8] sm:$0xff] }
   0x4   :  { %375 = vmatpush.bf16.msra.mxu2 %v3500_v2  ;;  %v3489_v11 = vld [vmem:[%s4827_s2 + $0x60] sm:$0xff]  ;;  %v27_v14 = vadd.s32 8, %v3744_v10  ;;  %v3488_v15 = vld [vmem:[%s4827_s2 + $0x58] sm:$0xff]  ;;  %v34_v19 = vand.u32 15, %v3744_v10  ;;  %v3779_v21 = vld [vmem:[%s4828_s0 + $0x8] sm:$0xff]  ;;  %vm115_vm1 = vcmp.lt.s32.totalorder %v3744_v10, 1 }
   0x5   :  { %v3481_v12 = vld [vmem:[%s4827_s2 + $0x20] sm:$0xff]  ;;  %v3480_v16 = vld [vmem:[%s4827_s2 + $0x18] sm:$0xff]  ;;  %v3784_v23 = vld [vmem:[%s4828_s0 + $0x10] sm:$0xff]  ;;  %v125_v30 = vrot.slane %v3779_v21, 1  ;;  %vm128_vm2 = vcmp.lt.s32.totalorder %v3744_v10, 7  ;;  %v112_v35 = vrot.slane %v3779_v21, 7 }
   0x6   :  { %223 = vmatpush.bf16.msra.mxu0 %v3491_v3  ;;  %v3497_v13 = vld [vmem:[%s4827_s2 + $0xa0] sm:$0xff]  ;;  %v3496_v17 = vld [vmem:[%s4827_s2 + $0x98] sm:$0xff]  ;;  %v41_v22 = vand.u32 15, %v27_v14  ;;  %v3487_v24 = vld [vmem:[%s4827_s2 + $0x50] sm:$0xff]  ;;  %vm78_vm0 = vcmp.ne.s32.totalorder %v34_v19, 0  ;;  %v126_v31 = vrot.slane %v3784_v23, 1 }
   0x7   :  { %290 = vmatpush.bf16.msra.mxu1 %v3483_v4  ;;  %v3768_v18 = vld [vmem:[%s4828_s0] sm:$0xff]  ;;  %v3774_v20 = vld [vmem:[%s4828_s0 + $0x18] sm:$0xff]  ;;  %v3479_v25 = vld [vmem:[%s4827_s2 + $0x10] sm:$0xff]  ;;  %v3814_v37 = vsel %vm78_vm0, 1.0, %v3676_v36  ;;  %v28_v50 = vadd.s32 16, %v3744_v10  ;;  %v29_v51 = vadd.s32 24, %v3744_v10 }
   0x8   :  { %376 = vmatpush.bf16.msra.mxu2 %v3499_v5  ;;  %v111_v26 = vrot.slane %v3768_v18, 7  ;;  %v114_v27 = vrot.slane %v3774_v20, 7  ;;  %v3516_v28 = vld [vmem:[%s4827_s2 + $0x138] sm:$0xff]  ;;  %v3495_v29 = vld [vmem:[%s4827_s2 + $0x90] sm:$0xff]  ;;  %vm91_vm3 = vcmp.ne.s32.totalorder %v41_v22, 15  ;;  %v3486_v33 = vld [vmem:[%s4827_s2 + $0x48] sm:$0xff]  ;;  %v130_v42 = vsel %vm128_vm2, %v125_v30, %v126_v31 }
   0x9   :  { %521 = vmatpush.bf16.msra.mxu3 %v3516_v28  ;;  %v3515_v32 = vld [vmem:[%s4827_s2 + $0x130] sm:$0xff]  ;;  %v3478_v34 = vld [vmem:[%s4827_s2 + $0x8] sm:$0xff]  ;;  %v124_v40 = vrot.slane %v3768_v18, 1  ;;  %v3822_v41 = vsel %vm91_vm3, 1.0, %v3676_v36  ;;  %v3485_v44 = vld [vmem:[%s4827_s2 + $0x40] sm:$0xff]  ;;  %v155_v52 = vpack.c.bf16 %v3779_v21, %v3768_v18  ;;  %v48_v55 = vand.u32 15, %v28_v50 }
   0xa   :  { %224 = vmatpush.bf16.msra.mxu0 %v3490_v7  ;;  %v119_v38 = vsel %vm115_vm1, %v114_v27, %v111_v26  ;;  %v3494_v39 = vld [vmem:[%s4827_s2 + $0x88] sm:$0xff]  ;;  %v3477_v45 = vld [vmem:[%s4827_s2] sm:$0xff]  ;;  %v118_v46 = vsel %vm115_vm1, %v111_v26, %v112_v35  ;;  %v134_v47 = vmul.f32 %v3822_v41, %v130_v42  ;;  %v55_v56 = vand.u32 15, %v29_v51  ;;  %v3519_v22 = vld [vmem:[%s4827_s2 + $0x150] sm:$0xff] }
   0xb   :  { %291 = vmatpush.bf16.msra.mxu1 %v3482_v8  ;;  %v120_v43 = vmul.f32 %v3814_v37, %v119_v38  ;;  %v3493_v48 = vld [vmem:[%s4827_s2 + $0x80] sm:$0xff]  ;;  %v131_v49 = vsel %vm128_vm2, %v124_v40, %v125_v30  ;;  %v113_v57 = vrot.slane %v3784_v23, 7  ;;  %vm80_vm4 = vcmp.ne.s32.totalorder %v48_v55, 0  ;;  %v3514_v6 = vld [vmem:[%s4827_s2 + $0x128] sm:$0xff]  ;;  %v3524_v8 = vld [vmem:[%s4827_s2 + $0x178] sm:$0xff] }
   0xc   :  { %377 = vmatpush.bf16.msra.mxu2 %v3498_v9  ;;  %v308_v54 = vpack.c.bf16 %v134_v47, %v131_v49  ;;  %v127_v58 = vrot.slane %v3774_v20, 1  ;;  %vm93_vm5 = vcmp.ne.s32.totalorder %v55_v56, 15  ;;  %v3847_v59 = vsel %vm80_vm4, 1.0, %v3676_v36  ;;  %v3513_v7 = vld [vmem:[%s4827_s2 + $0x120] sm:$0xff]  ;;  %v3512_v9 = vld [vmem:[%s4827_s2 + $0x118] sm:$0xff]  ;;  %v3522_v14 = vld [vmem:[%s4827_s2 + $0x168] sm:$0xff] }
   0xd   :  { %522 = vmatpush.bf16.msra.mxu3 %v3515_v32  ;;  %v137_v53 = vpack.c.bf16 %v118_v46, %v120_v43  ;;  %v117_v60 = vsel %vm115_vm1, %v112_v35, %v113_v57  ;;  %v3851_v61 = vsel %vm93_vm5, 1.0, %v3676_v36  ;;  %v116_v0 = vsel %vm115_vm1, %v113_v57, %v114_v27  ;;  %v3509_v18 = vld [vmem:[%s4827_s2 + $0x100] sm:$0xff]  ;;  %v3506_v19 = vld [vmem:[%s4827_s2 + $0xe8] sm:$0xff]  ;;  %v3532_v26 = vld [vmem:[%s4827_s2 + $0x278] sm:$0xff] }
   0xe   :  { %225 = vmatpush.bf16.msra.mxu0 %v3489_v11  ;;  %v132_v62 = vsel %vm128_vm2, %v127_v58, %v124_v40  ;;  %v122_v63 = vmul.f32 %v3847_v59, %v117_v60  ;;  %v129_v2 = vsel %vm128_vm2, %v126_v31, %v127_v58  ;;  %v156_v3 = vpack.c.bf16 %v3774_v20, %v3784_v23  ;;  %v3523_v11 = vld [vmem:[%s4827_s2 + $0x170] sm:$0xff]  ;;  %v3520_v20 = vld [vmem:[%s4827_s2 + $0x158] sm:$0xff]  ;;  %v3505_v21 = vld [vmem:[%s4827_s2 + $0xe0] sm:$0xff] }
   0xf   :  { %292 = vmatpush.bf16.msra.mxu1 %v3481_v12  ;;  %v136_v1 = vmul.f32 %v3851_v61, %v132_v62  ;;  %v3511_v12 = vld [vmem:[%s4827_s2 + $0x110] sm:$0xff]  ;;  %v3504_v23 = vld [vmem:[%s4827_s2 + $0xd8] sm:$0xff]  ;;  %v3517_v30 = vld [vmem:[%s4827_s2 + $0x140] sm:$0xff] }
  0x10   :  { %378 = vmatpush.bf16.msra.mxu2 %v3497_v13  ;;  %v138_v4 = vpack.c.bf16 %v116_v0, %v122_v63  ;;  %v3508_v13 = vld [vmem:[%s4827_s2 + $0xf8] sm:$0xff]  ;;  %v3539_v31 = vld [vmem:[%s4827_s2 + $0x2b0] sm:$0xff]  ;;  %v3530_v35 = vld [vmem:[%s4827_s2 + $0x268] sm:$0xff] }
  0x11   :  { %v309_v5 = vpack.c.bf16 %v136_v1, %v129_v2  ;;  %523 = vmatpush.bf16.msra.mxu3 %v3514_v6  ;;  %v3531_v32 = vld [vmem:[%s4827_s2 + $0x270] sm:$0xff]  ;;  %v3501_v42 = vld [vmem:[%s4827_s2 + $0xc0] sm:$0xff]  ;;  %v3548_v47 = vld [vmem:[%s4827_s2 + $0x2f8] sm:$0xff] }
  0x12   :  { %226 = vmatpush.bf16.msra.mxu0 %v3488_v15  ;;  %v3510_v15 = vld [vmem:[%s4827_s2 + $0x108] sm:$0xff]  ;;  %v3537_v43 = vld [vmem:[%s4827_s2 + $0x2a0] sm:$0xff]  ;;  %v3528_v49 = vld [vmem:[%s4827_s2 + $0x258] sm:$0xff] }
  0x13   :  { %293 = vmatpush.bf16.msra.mxu1 %v3480_v16  ;;  %v3507_v16 = vld [vmem:[%s4827_s2 + $0xf0] sm:$0xff]  ;;  %v3546_v1 = vld [vmem:[%s4827_s2 + $0x2e8] sm:$0xff] }
  0x14   :  { %379 = vmatpush.bf16.msra.mxu2 %v3496_v17  ;;  %v3521_v17 = vld [vmem:[%s4827_s2 + $0x160] sm:$0xff]  ;;  %v3547_v51 = vld [vmem:[%s4827_s2 + $0x2f0] sm:$0xff]  ;;  %v3534_v2 = vld [vmem:[%s4827_s2 + $0x288] sm:$0xff] }
  0x15   :  { %524 = vmatpush.bf16.msra.mxu3 %v3513_v7  ;;  %v3533_v7 = vld [vmem:[%s4827_s2 + $0x280] sm:$0xff] }
  0x16   :  { %227 = vmatpush.bf16.msra.mxu0 %v3487_v24  ;;  %v3518_v24 = vld [vmem:[%s4827_s2 + $0x148] sm:$0xff] }
  0x17   :  { %294 = vmatpush.bf16.msra.mxu1 %v3479_v25  ;;  %v3540_v25 = vld [vmem:[%s4827_s2 + $0x2b8] sm:$0xff] }
  0x18   :  { %380 = vmatpush.bf16.msra.mxu2 %v3495_v29  ;;  %v3503_v29 = vld [vmem:[%s4827_s2 + $0xd0] sm:$0xff] }
  0x19   :  { %525 = vmatpush.bf16.msra.mxu3 %v3512_v9 }
  0x1a   :  { %228 = vmatpush.bf16.msra.mxu0 %v3486_v33  ;;  %v3502_v33 = vld [vmem:[%s4827_s2 + $0xc8] sm:$0xff] }
  0x1b   :  { %295 = vmatpush.bf16.msra.mxu1 %v3478_v34  ;;  %v3538_v34 = vld [vmem:[%s4827_s2 + $0x2a8] sm:$0xff] }
  0x1c   :  { %381 = vmatpush.bf16.msra.mxu2 %v3494_v39 }
  0x1d   :  { %526 = vmatpush.bf16.msra.mxu3 %v3511_v12  ;;  %v4001_v12 = vld [vmem:[%s4830_s1] sm:$0xff] }
  0x1e   :  { %229 = vmatpush.bf16.msra.mxu0 %v3485_v44  ;;  %v3529_v44 = vld [vmem:[%s4827_s2 + $0x260] sm:$0xff] }
  0x1f   :  { %296 = vmatpush.bf16.msra.mxu1 %v3477_v45  ;;  %v3670_v45 = vld [vmem:[%s4829_s3] ss:$0 sm:$0xff] }
  0x20   :  { %382 = vmatpush.bf16.msra.mxu2 %v3493_v48  ;;  %v3536_v48 = vld [vmem:[%s4827_s2 + $0x298] sm:$0xff] }
  0x21   :  { %230 = vmatmul.bf16.vlgmr.msra.gmra.mxu0 %v155_v52  ;;  %527 = vmatpush.bf16.msra.mxu3 %v3510_v15 }
  0x22   :  { %297 = vmatmul.bf16.vlgmr.msra.gmra.mxu1 %v137_v53  ;;  %588 = vmatpush.bf16.msrb.mxu0 %v3508_v13  ;;  %v3535_v53 = vld [vmem:[%s4827_s2 + $0x290] sm:$0xff]  ;;  %v4006_v13 = vld [vmem:[%s4830_s1 + $0x8] sm:$0xff] }
  0x23   :  { %383 = vmatmul.bf16.vlgmr.msra.gmra.mxu2 %v308_v54  ;;  %674 = vmatpush.bf16.msrb.mxu1 %v3524_v8  ;;  %v3527_v54 = vld [vmem:[%s4827_s2 + $0x250] sm:$0xff]  ;;  %v3525_v8 = vld [vmem:[%s4827_s2 + $0x240] sm:$0xff] }
  0x24   :  { %820 = vmatpush.bf16.msrb.mxu2 %v3540_v25 }
  0x25   :  { %528 = vmatpush.bf16.msra.mxu3 %v3509_v18  ;;  %v3544_v18 = vld [vmem:[%s4827_s2 + $0x2d8] sm:$0xff] }
  0x26   :  { %589 = vmatpush.bf16.msrb.mxu0 %v3507_v16  ;;  %v753_v16 = vpack.c.bf16 %v4006_v13, %v4001_v12 }
  0x27   :  { %675 = vmatpush.bf16.msrb.mxu1 %v3523_v11 }
  0x28   :  { %821 = vmatpush.bf16.msrb.mxu2 %v3539_v31 }
  0x29   :  { %887 = vmatpush.bf16.msrb.mxu3 %v3532_v26 }
  0x2a   :  { %590 = vmatpush.bf16.msrb.mxu0 %v3506_v19 }
  0x2b   :  { %676 = vmatpush.bf16.msrb.mxu1 %v3522_v14 }
  0x2c   :  { %822 = vmatpush.bf16.msrb.mxu2 %v3538_v34 }
  0x2d   :  { %888 = vmatpush.bf16.msrb.mxu3 %v3531_v32 }
  0x2e   :  { %591 = vmatpush.bf16.msrb.mxu0 %v3505_v21 }
  0x2f   :  { %677 = vmatpush.bf16.msrb.mxu1 %v3521_v17 }
  0x30   :  { %823 = vmatpush.bf16.msrb.mxu2 %v3537_v43 }
  0x31   :  { %235 = vmatmul.bf16.gmra.mxu0 %v156_v3  ;;  %889 = vmatpush.bf16.msrb.mxu3 %v3530_v35  ;;  %v3526_v3 = vld [vmem:[%s4827_s2 + $0x248] sm:$0xff] }
  0x32   :  { %302 = vmatmul.bf16.gmra.mxu1 %v138_v4  ;;  %592 = vmatpush.bf16.msrb.mxu0 %v3504_v23 }
  0x33   :  { %388 = vmatmul.bf16.gmra.mxu2 %v309_v5  ;;  %678 = vmatpush.bf16.msrb.mxu1 %v3520_v20  ;;  %v3545_v5 = vld [vmem:[%s4827_s2 + $0x2e0] sm:$0xff] }
  0x34   :  { %824 = vmatpush.bf16.msrb.mxu2 %v3536_v48 }
  0x35   :  { %890 = vmatpush.bf16.msrb.mxu3 %v3529_v44  ;;  %v710_v44 = vrot.slane %v4001_v12, 7 }
  0x36   :  { %593 = vmatpush.bf16.msrb.mxu0 %v3503_v29 }
  0x37   :  { %679 = vmatpush.bf16.msrb.mxu1 %v3519_v22  ;;  %v3543_v22 = vld [vmem:[%s4827_s2 + $0x2d0] sm:$0xff] }
  0x38   :  { %825 = vmatpush.bf16.msrb.mxu2 %v3535_v53 }
  0x39   :  { %891 = vmatpush.bf16.msrb.mxu3 %v3528_v49 }
  0x3a   :  { %594 = vmatpush.bf16.msrb.mxu0 %v3502_v33 }
  0x3b   :  { %680 = vmatpush.bf16.msrb.mxu1 %v3518_v24 }
  0x3c   :  { %826 = vmatpush.bf16.msrb.mxu2 %v3534_v2 }
  0x3d   :  { %892 = vmatpush.bf16.msrb.mxu3 %v3527_v54 }
  0x3e   :  { %595 = vmatpush.bf16.msrb.mxu0 %v3501_v42 }
  0x3f   :  { %681 = vmatpush.bf16.msrb.mxu1 %v3517_v30  ;;  %v3542_v30 = vld [vmem:[%s4827_s2 + $0x2c8] sm:$0xff] }
  0x40   :  { %827 = vmatpush.bf16.msrb.mxu2 %v3533_v7 }
  0x41   :  { %893 = vmatpush.bf16.msrb.mxu3 %v3526_v3 }
  0x42   :  { %973 = vmatpush.bf16.msra.mxu0 %v3548_v47 }
  0x43   :  { %828 = vmatmul.bf16.vlgmr.msrb.gmra.mxu2 %v753_v16 }
  0x45   :  { %894 = vmatpush.bf16.msrb.mxu3 %v3525_v8 }
  0x46   :  { %974 = vmatpush.bf16.msra.mxu0 %v3547_v51  ;;  %v711_v51 = vrot.slane %v4006_v13, 7 }
  0x4a   :  { %975 = vmatpush.bf16.msra.mxu0 %v3546_v1 }
  0x4e   :  { %976 = vmatpush.bf16.msra.mxu0 %v3545_v5 }
  0x52   :  { %977 = vmatpush.bf16.msra.mxu0 %v3544_v18 }
  0x56   :  { %978 = vmatpush.bf16.msra.mxu0 %v3543_v22 }
  0x5a   :  { %979 = vmatpush.bf16.msra.mxu0 %v3542_v30 }
  0x9e   :  { %v231_v27 = vpop.f32.mrf.mxu0 }
  0x9f   :  { %v298_v28 = vpop.f32.mrf.mxu1 }
  0xa0   :  { %v299_v38 = vadd.f32 %v298_v28, %v231_v27 }
  0xa6   :  { %v384_v36 = vpop.f32.mrf.mxu2  ;;  %v233_v39 = vpop.f32.mrf.mxu0 }
  0xa7   :  { %v300_v40 = vpop.f32.mrf.mxu1  ;;  %v394_v46 = vadd.f32 %v384_v36, %v299_v38  ;;  %v109_v38 = vld [vmem:[%s4830_s1 + $0x18] sm:$0xff] }
  0xa8   :  { %v301_v50 = vadd.f32 %v300_v40, %v233_v39  ;;  %v3541_v39 = vld [vmem:[%s4827_s2 + $0x2c0] sm:$0xff] }
  0xa9   :  { %v401_v55 = vadd.f32 %v3670_v45, %v394_v46  ;;  %v108_v46 = vld [vmem:[%s4830_s1 + $0x10] sm:$0xff]  ;;  %980 = vmatpush.bf16.msra.mxu0 %v3541_v39  ;;  %v3570_v39 = vld [vmem:[%s4827_s2 + $0x3a8] sm:$0xff] }
  0xaa   :  { %v754_v48 = vpack.c.bf16 %v109_v38, %v108_v46  ;;  %v712_v3 = vrot.slane %v108_v46, 7  ;;  %v724_v7 = vrot.slane %v108_v46, 1  ;;  %v3557_v46 = vld [vmem:[%s4827_s2 + $0x340] sm:$0xff] }
  0xab   :  { %v3974_v62 = vmax.f32 %v401_v55, 0.0  ;;  %v716_v55 = vsel %vm115_vm1, %v710_v44, %v711_v51 }
  0xac   :  { %833 = vmatmul.bf16.gmra.mxu2 %v754_v48  ;;  %v715_v5 = vsel %vm115_vm1, %v711_v51, %v712_v3  ;;  %v3568_v48 = vld [vmem:[%s4827_s2 + $0x398] sm:$0xff] }
  0xad   :  { %v423_v25 = vrot.slane %v3974_v62, 1  ;;  %v411_v35 = vrot.slane %v3974_v62, 7  ;;  %v720_v8 = vmul.f32 %v3847_v59, %v715_v5 }
  0xae   :  { %v386_v52 = vpop.f32.mrf.mxu2  ;;  %v236_v57 = vpop.f32.mrf.mxu0 }
  0xaf   :  { %v395_v56 = vadd.f32 %v386_v52, %v301_v50  ;;  %v303_v58 = vpop.f32.mrf.mxu1 }
  0xb0   :  { %v304_v0 = vadd.f32 %v303_v58, %v236_v57 }
  0xb1   :  { %v402_v60 = vadd.f32 %v3670_v45, %v395_v56 }
  0xb3   :  { %v3976_v63 = vmax.f32 %v402_v60, 0.0 }
  0xb5   :  { %v454_v4 = vpack.c.bf16 %v3976_v63, %v3974_v62  ;;  %v424_v21 = vrot.slane %v3976_v63, 1  ;;  %v412_v36 = vrot.slane %v3976_v63, 7 }
  0xb6   :  { %v389_v6 = vpop.f32.mrf.mxu2  ;;  %v238_v14 = vpop.f32.mrf.mxu0 }
  0xb7   :  { %v396_v9 = vadd.f32 %v389_v6, %v304_v0  ;;  %529 = vmatmul.bf16.vlgmr.msra.gmra.mxu3 %v454_v4  ;;  %v305_v15 = vpop.f32.mrf.mxu1  ;;  %v429_v29 = vsel %vm128_vm2, %v423_v25, %v424_v21  ;;  %v417_v47 = vsel %vm115_vm1, %v411_v35, %v412_v36  ;;  %v723_v6 = vrot.slane %v4006_v13, 1 }
  0xb8   :  { %v306_v20 = vadd.f32 %v305_v15, %v238_v14  ;;  %v725_v13 = vrot.slane %v109_v38, 1 }
  0xb9   :  { %v403_v11 = vadd.f32 %v3670_v45, %v396_v9  ;;  %v727_v14 = vsel %vm128_vm2, %v723_v6, %v724_v7 }
  0xba   :  { %v731_v16 = vmul.f32 %v3822_v41, %v727_v14 }
  0xbb   :  { %v4010_v17 = vmax.f32 %v403_v11, 0.0  ;;  %v722_v11 = vrot.slane %v4001_v12, 1  ;;  %v726_v12 = vsel %vm128_vm2, %v724_v7, %v725_v13  ;;  %v3549_v7 = vld [vmem:[%s4827_s2 + $0x300] sm:$0xff] }
  0xbd   :  { %v425_v19 = vrot.slane %v4010_v17, 1  ;;  %v413_v57 = vrot.slane %v4010_v17, 7  ;;  %v728_v18 = vsel %vm128_vm2, %v722_v11, %v723_v6 }
  0xbe   :  { %v391_v23 = vpop.f32.mrf.mxu2 }
  0xbf   :  { %v397_v24 = vadd.f32 %v391_v23, %v306_v20  ;;  %v428_v26 = vsel %vm128_vm2, %v424_v21, %v425_v19  ;;  %v416_v0 = vsel %vm115_vm1, %v412_v36, %v413_v57  ;;  %v729_v20 = vsel %vm128_vm2, %v725_v13, %v722_v11  ;;  %v3564_v23 = vld [vmem:[%s4827_s2 + $0x378] sm:$0xff]  ;;  %v3559_v36 = vld [vmem:[%s4827_s2 + $0x350] sm:$0xff] }
  0xc0   :  { %v432_v27 = vmul.f32 %v3822_v41, %v428_v26  ;;  %v421_v2 = vmul.f32 %v3847_v59, %v416_v0  ;;  %v733_v21 = vmul.f32 %v3851_v61, %v729_v20  ;;  %1119 = vmatpush.bf16.msra.mxu1 %v3564_v23  ;;  %v3562_v26 = vld [vmem:[%s4827_s2 + $0x368] sm:$0xff]  ;;  %v3551_v0 = vld [vmem:[%s4827_s2 + $0x310] sm:$0xff] }
  0xc1   :  { %v404_v28 = vadd.f32 %v3670_v45, %v397_v24  ;;  %v713_v45 = vrot.slane %v109_v38, 7  ;;  %v3556_v38 = vld [vmem:[%s4827_s2 + $0x338] sm:$0xff] }
  0xc2   :  { %v607_v31 = vpack.c.bf16 %v432_v27, %v429_v29  ;;  %v907_v22 = vpack.c.bf16 %v733_v21, %v726_v12  ;;  %v3572_v29 = vld [vmem:[%s4827_s2 + $0x3b8] sm:$0xff]  ;;  %1186 = vmatpush.bf16.msra.mxu2 %v3556_v38 }
  0xc3   :  { %v4029_v32 = vmax.f32 %v404_v28, 0.0  ;;  %v717_v52 = vsel %vm115_vm1, %v713_v45, %v710_v44  ;;  %v714_v9 = vsel %vm115_vm1, %v712_v3, %v713_v45  ;;  %v3561_v28 = vld [vmem:[%s4827_s2 + $0x360] sm:$0xff]  ;;  %1272 = vmatpush.bf16.msra.mxu3 %v3572_v29  ;;  %v3555_v44 = vld [vmem:[%s4827_s2 + $0x330] sm:$0xff] }
  0xc4   :  { %682 = vmatmul.bf16.vlgmr.msrb.gmra.mxu1 %v607_v31  ;;  %v718_v54 = vmul.f32 %v3814_v37, %v717_v52  ;;  %v735_v15 = vpack.c.bf16 %v714_v9, %v720_v8  ;;  %v3560_v31 = vld [vmem:[%s4827_s2 + $0x358] sm:$0xff]  ;;  %v3569_v45 = vld [vmem:[%s4827_s2 + $0x3a0] sm:$0xff] }
  0xc5   :  { %v414_v33 = vrot.slane %v4029_v32, 7  ;;  %v455_v34 = vpack.c.bf16 %v4029_v32, %v4010_v17  ;;  %v426_v42 = vrot.slane %v4029_v32, 1  ;;  %v3553_v52 = vld [vmem:[%s4827_s2 + $0x320] sm:$0xff] }
  0xc6   :  { %v734_v60 = vpack.c.bf16 %v716_v55, %v718_v54  ;;  %1187 = vmatpush.bf16.msra.mxu2 %v3555_v44  ;;  %v829_v54 = vpop.f32.mrf.mxu2  ;;  %v3552_v55 = vld [vmem:[%s4827_s2 + $0x318] sm:$0xff]  ;;  %v3672_v9 = vld [vmem:[%s4829_s3 + $0x3] ss:$0 sm:$0xff] }
  0xc7   :  { %534 = vmatmul.bf16.gmra.mxu3 %v455_v34  ;;  %v418_v40 = vsel %vm115_vm1, %v414_v33, %v411_v35  ;;  %v430_v50 = vsel %vm128_vm2, %v426_v42, %v423_v25  ;;  %v427_v56 = vsel %vm128_vm2, %v425_v19, %v426_v42  ;;  %v415_v1 = vsel %vm115_vm1, %v413_v57, %v414_v33  ;;  %v3563_v25 = vld [vmem:[%s4827_s2 + $0x370] sm:$0xff]  ;;  %v3558_v42 = vld [vmem:[%s4827_s2 + $0x348] sm:$0xff] }
  0xc8   :  { %v419_v43 = vmul.f32 %v3814_v37, %v418_v40  ;;  %v434_v53 = vmul.f32 %v3851_v61, %v430_v50  ;;  %v436_v4 = vpack.c.bf16 %v415_v1, %v421_v2  ;;  %v906_v19 = vpack.c.bf16 %v731_v16, %v728_v18  ;;  %1120 = vmatpush.bf16.msra.mxu1 %v3563_v25  ;;  %v3571_v34 = vld [vmem:[%s4827_s2 + $0x3b0] sm:$0xff]  ;;  %v3565_v1 = vld [vmem:[%s4827_s2 + $0x380] sm:$0xff]  ;;  %v3550_v2 = vld [vmem:[%s4827_s2 + $0x308] sm:$0xff] }
  0xc9   :  { %1273 = vmatpush.bf16.msra.mxu3 %v3571_v34 }
  0xca   :  { %v435_v49 = vpack.c.bf16 %v417_v47, %v419_v43  ;;  %v608_v58 = vpack.c.bf16 %v434_v53, %v427_v56  ;;  %v3554_v47 = vld [vmem:[%s4827_s2 + $0x328] sm:$0xff]  ;;  %v3567_v53 = vld [vmem:[%s4827_s2 + $0x390] sm:$0xff] }
  0xcb   :  { %1188 = vmatpush.bf16.msra.mxu2 %v3554_v47  ;;  %v3566_v56 = vld [vmem:[%s4827_s2 + $0x388] sm:$0xff] }
  0xcc   :  { %596 = vmatmul.bf16.vlgmr.msrb.gmra.mxu0 %v435_v49  ;;  %1121 = vmatpush.bf16.msra.mxu1 %v3562_v26 }
  0xcd   :  { %1274 = vmatpush.bf16.msra.mxu3 %v3570_v39 }
  0xce   :  { %v831_v3 = vpop.f32.mrf.mxu2 }
  0xcf   :  { %1189 = vmatpush.bf16.msra.mxu2 %v3553_v52 }
  0xd0   :  { %1122 = vmatpush.bf16.msra.mxu1 %v3561_v28 }
  0xd1   :  { %1275 = vmatpush.bf16.msra.mxu3 %v3569_v45 }
  0xd3   :  { %1190 = vmatpush.bf16.msra.mxu2 %v3552_v55 }
  0xd4   :  { %687 = vmatmul.bf16.gmra.mxu1 %v608_v58 }
  0xd5   :  { %1123 = vmatpush.bf16.msra.mxu1 %v3560_v31  ;;  %1276 = vmatpush.bf16.msra.mxu3 %v3568_v48 }
  0xd7   :  { %895 = vmatmul.bf16.vlgmr.msrb.gmra.mxu3 %v734_v60  ;;  %1191 = vmatpush.bf16.msra.mxu2 %v3551_v0 }
  0xd9   :  { %1124 = vmatpush.bf16.msra.mxu1 %v3559_v36  ;;  %1277 = vmatpush.bf16.msra.mxu3 %v3567_v53 }
  0xdb   :  { %1192 = vmatpush.bf16.msra.mxu2 %v3550_v2 }
  0xdc   :  { %601 = vmatmul.bf16.gmra.mxu0 %v436_v4 }
  0xdd   :  { %1125 = vmatpush.bf16.msra.mxu1 %v3558_v42  ;;  %1278 = vmatpush.bf16.msra.mxu3 %v3566_v56 }
  0xdf   :  { %1193 = vmatpush.bf16.msra.mxu2 %v3549_v7  ;;  %v3604_v7 = vld [vmem:[%s4831_s4 + $0xf4] sm:$0xf0] }
  0xe1   :  { %1126 = vmatpush.bf16.msra.mxu1 %v3557_v46  ;;  %1279 = vmatpush.bf16.msra.mxu3 %v3565_v1 }
  0xe7   :  { %900 = vmatmul.bf16.gmra.mxu3 %v735_v15 }
  0xec   :  { %981 = vmatmul.bf16.vlgmr.msra.gmra.mxu0 %v906_v19 }
  0xfc   :  { %986 = vmatmul.bf16.gmra.mxu0 %v907_v22 }
 0x12f   :  { %v834_v18 = vpop.f32.mrf.mxu2 }
 0x137   :  { %v836_v26 = vpop.f32.mrf.mxu2 }
 0x13a   :  { %v530_v24 = vpop.f32.mrf.mxu3 }
 0x142   :  { %v532_v27 = vpop.f32.mrf.mxu3 }
 0x149   :  { %v597_v30 = vpop.f32.mrf.mxu0 }
 0x14a   :  { %v4104_v33 = vadd.f32 %v597_v30, %v530_v24  ;;  %v535_v35 = vpop.f32.mrf.mxu3 }
 0x151   :  { %v599_v40 = vpop.f32.mrf.mxu0 }
 0x152   :  { %v4121_v43 = vadd.f32 %v599_v40, %v532_v27  ;;  %v537_v49 = vpop.f32.mrf.mxu3 }
 0x159   :  { %v602_v50 = vpop.f32.mrf.mxu0 }
 0x15a   :  { %v4138_v51 = vadd.f32 %v602_v50, %v535_v35  ;;  %v896_v57 = vpop.f32.mrf.mxu3 }
 0x15b   :  { %v897_v6 = vadd.f32 %v896_v57, %v829_v54 }
 0x161   :  { %v604_v58 = vpop.f32.mrf.mxu0 }
 0x162   :  { %v4152_v60 = vadd.f32 %v604_v58, %v537_v49  ;;  %v898_v4 = vpop.f32.mrf.mxu3 }
 0x163   :  { %v899_v11 = vadd.f32 %v898_v4, %v831_v3 }
 0x169   :  { %v982_v5 = vpop.f32.mrf.mxu0 }
 0x16a   :  { %v992_v8 = vadd.f32 %v982_v5, %v897_v6  ;;  %v901_v19 = vpop.f32.mrf.mxu3  ;;  %v3037_v6 = vld [vmem:[%s4831_s4 + $0xf0] sm:$0xf] }
 0x16b   :  { %v902_v21 = vadd.f32 %v901_v19, %v834_v18  ;;  %v3602_v18 = vld [vmem:[%s4831_s4 + $0xe4] sm:$0xf0]  ;;  %v3601_v19 = vld [vmem:[%s4831_s4 + $0xe4] sm:$0xf] }
 0x16c   :  { %v999_v15 = vadd.f32 %v3672_v9, %v992_v8  ;;  %v3603_v8 = vld [vmem:[%s4831_s4 + $0xf4] sm:$0xf] }
 0x16e   :  { %v4169_v20 = vmax.f32 %v999_v15, 0.0 }
 0x170   :  { %v1021_v35 = vrot.slane %v4169_v20, 1  ;;  %v1009_v46 = vrot.slane %v4169_v20, 7 }
 0x171   :  { %v984_v14 = vpop.f32.mrf.mxu0 }
 0x172   :  { %v993_v16 = vadd.f32 %v984_v14, %v899_v11  ;;  %v903_v27 = vpop.f32.mrf.mxu3  ;;  %v3038_v11 = vor.u32 %v3604_v7, %v3037_v6  ;;  %v3039_v14 = vld [vmem:[%s4831_s4 + $0xf8] sm:$0xf0]  ;;  %v3591_v6 = vld [vmem:[%s4831_s4 + $0x94] sm:$0xf] }
 0x173   :  { %v904_v30 = vadd.f32 %v903_v27, %v836_v26  ;;  %v3042_v15 = vor.u32 %v3603_v8, %v3039_v14  ;;  %v3023_v27 = vld [vmem:[%s4831_s4 + $0xd8] sm:$0xf0]  ;;  %v3586_v14 = vld [vmem:[%s4831_s4 + $0x64] sm:$0xf0] }
 0x174   :  { %v1000_v13 = vadd.f32 %v3672_v9, %v993_v16  ;;  %1452 = vmatpush.bf16.msrb.mxu0 %v3038_v11  ;;  %v3029_v16 = vld [vmem:[%s4831_s4 + $0xe0] sm:$0xf]  ;;  %v2991_v8 = vld [vmem:[%s4831_s4 + $0x98] sm:$0xf0] }
 0x175   :  { %1471 = vmatpush.bf16.msrb.mxu1 %v3042_v15  ;;  %v3093_v11 = vld [vmem:[%s4831_s4 + $0x60] sm:$0xf]  ;;  %v2994_v15 = vor.u32 %v3591_v6, %v2991_v8  ;;  %v3579_v6 = vld [vmem:[%s4831_s4 + $0x34] sm:$0xf] }
 0x176   :  { %v4171_v12 = vmax.f32 %v1000_v13, 0.0  ;;  %v3030_v13 = vor.u32 %v3602_v18, %v3029_v16  ;;  %v3094_v16 = vor.u32 %v3586_v14, %v3093_v11  ;;  %v3585_v18 = vld [vmem:[%s4831_s4 + $0x64] sm:$0xf]  ;;  %v3165_v14 = vld [vmem:[%s4831_s4 + $0x150] sm:$0xf] }
 0x178   :  { %v1052_v22 = vpack.c.bf16 %v4171_v12, %v4169_v20  ;;  %v1022_v29 = vrot.slane %v4171_v12, 1  ;;  %v1010_v47 = vrot.slane %v4171_v12, 7  ;;  %1453 = vmatpush.bf16.msrb.mxu0 %v3030_v13 }
 0x179   :  { %v987_v23 = vpop.f32.mrf.mxu0 }
 0x17a   :  { %v994_v24 = vadd.f32 %v987_v23, %v902_v21  ;;  %1127 = vmatmul.bf16.vlgmr.msra.gmra.mxu1 %v1052_v22  ;;  %v1027_v42 = vsel %vm128_vm2, %v1021_v35, %v1022_v29  ;;  %v1015_v54 = vsel %vm115_vm1, %v1009_v46, %v1010_v47  ;;  %v3031_v21 = vld [vmem:[%s4831_s4 + $0xe8] sm:$0xf0]  ;;  %v3021_v23 = vld [vmem:[%s4831_s4 + $0xd0] sm:$0xf] }
 0x17b   :  { %v3034_v22 = vor.u32 %v3601_v19, %v3031_v21  ;;  %v3095_v19 = vld [vmem:[%s4831_s4 + $0x68] sm:$0xf0]  ;;  %v2981_v21 = vld [vmem:[%s4831_s4 + $0x80] sm:$0xf] }
 0x17c   :  { %v1001_v25 = vadd.f32 %v3672_v9, %v994_v24  ;;  %v3600_v24 = vld [vmem:[%s4831_s4 + $0xd4] sm:$0xf0]  ;;  %v3098_v13 = vor.u32 %v3585_v18, %v3095_v19 }
 0x17d   :  { %1472 = vmatpush.bf16.msrb.mxu1 %v3034_v22  ;;  %v3022_v26 = vor.u32 %v3600_v24, %v3021_v23  ;;  %v3590_v22 = vld [vmem:[%s4831_s4 + $0x84] sm:$0xf0]  ;;  %v3589_v23 = vld [vmem:[%s4831_s4 + $0x84] sm:$0xf] }
 0x17e   :  { %v4175_v28 = vmax.f32 %v1001_v25, 0.0  ;;  %v3599_v25 = vld [vmem:[%s4831_s4 + $0xd4] sm:$0xf]  ;;  %v2982_v24 = vor.u32 %v3590_v22, %v2981_v21  ;;  %v3061_v21 = vld [vmem:[%s4831_s4 + $0x20] sm:$0xf] }
 0x17f   :  { %1454 = vmatpush.bf16.msrb.mxu0 %v3022_v26  ;;  %v3085_v26 = vld [vmem:[%s4831_s4 + $0x50] sm:$0xf]  ;;  %v3578_v22 = vld [vmem:[%s4831_s4 + $0x24] sm:$0xf0] }
 0x180   :  { %v1023_v31 = vrot.slane %v4175_v28, 1  ;;  %v1011_v0 = vrot.slane %v4175_v28, 7 }
 0x181   :  { %v989_v34 = vpop.f32.mrf.mxu0 }
 0x182   :  { %v995_v36 = vadd.f32 %v989_v34, %v904_v30  ;;  %v1026_v38 = vsel %vm128_vm2, %v1022_v29, %v1023_v31  ;;  %v1014_v2 = vsel %vm115_vm1, %v1010_v47, %v1011_v0  ;;  %v3026_v29 = vor.u32 %v3599_v25, %v3023_v27  ;;  %v3598_v34 = vld [vmem:[%s4831_s4 + $0xc4] sm:$0xf0]  ;;  %v3007_v47 = vld [vmem:[%s4831_s4 + $0xb8] sm:$0xf0]  ;;  %v2983_v25 = vld [vmem:[%s4831_s4 + $0x88] sm:$0xf0] }
 0x183   :  { %v1030_v39 = vmul.f32 %v3822_v41, %v1026_v38  ;;  %v1019_v4 = vmul.f32 %v3847_v59, %v1014_v2  ;;  %v3015_v38 = vld [vmem:[%s4831_s4 + $0xc8] sm:$0xf0]  ;;  %v3103_v2 = vld [vmem:[%s4831_s4 + $0x78] sm:$0xf0]  ;;  %v3584_v27 = vld [vmem:[%s4831_s4 + $0x54] sm:$0xf0] }
 0x184   :  { %v1002_v40 = vadd.f32 %v3672_v9, %v995_v36  ;;  %v4218_v9 = vpop.f32.mrf.mxu1  ;;  %1473 = vmatpush.bf16.msrb.mxu1 %v3026_v29  ;;  %v2986_v29 = vor.u32 %v3589_v23, %v2983_v25  ;;  %v3577_v25 = vld [vmem:[%s4831_s4 + $0x24] sm:$0xf] }
 0x185   :  { %v1205_v44 = vpack.c.bf16 %v1030_v39, %v1027_v42  ;;  %v3596_v42 = vld [vmem:[%s4831_s4 + $0xb4] sm:$0xf0] }
 0x186   :  { %v4185_v45 = vmax.f32 %v1002_v40, 0.0  ;;  %v3005_v40 = vld [vmem:[%s4831_s4 + $0xb0] sm:$0xf] }
 0x187   :  { %1280 = vmatmul.bf16.vlgmr.msra.gmra.mxu3 %v1205_v44  ;;  %v3006_v44 = vor.u32 %v3596_v42, %v3005_v40  ;;  %v3620_v40 = vld [vmem:[%s4831_s4 + $0x174] sm:$0xf0]  ;;  %v3619_v42 = vld [vmem:[%s4831_s4 + $0x174] sm:$0xf] }
 0x188   :  { %v1012_v48 = vrot.slane %v4185_v45, 7  ;;  %v1053_v49 = vpack.c.bf16 %v4185_v45, %v4175_v28  ;;  %v1024_v52 = vrot.slane %v4185_v45, 1 }
 0x18a   :  { %1132 = vmatmul.bf16.gmra.mxu1 %v1053_v49  ;;  %v1016_v50 = vsel %vm115_vm1, %v1012_v48, %v1009_v46  ;;  %v1028_v56 = vsel %vm128_vm2, %v1024_v52, %v1021_v35  ;;  %v1025_v58 = vsel %vm128_vm2, %v1023_v31, %v1024_v52  ;;  %v1013_v3 = vsel %vm115_vm1, %v1011_v0, %v1012_v48  ;;  %v3013_v31 = vld [vmem:[%s4831_s4 + $0xc0] sm:$0xf]  ;;  %v3597_v35 = vld [vmem:[%s4831_s4 + $0xc4] sm:$0xf]  ;;  %v3595_v46 = vld [vmem:[%s4831_s4 + $0xb4] sm:$0xf] }
 0x18b   :  { %v1017_v53 = vmul.f32 %v3814_v37, %v1016_v50  ;;  %v1032_v57 = vmul.f32 %v3851_v61, %v1028_v56  ;;  %v1034_v5 = vpack.c.bf16 %v1013_v3, %v1019_v4  ;;  %v3014_v36 = vor.u32 %v3598_v34, %v3013_v31  ;;  %v2997_v49 = vld [vmem:[%s4831_s4 + $0xa0] sm:$0xf]  ;;  %v3594_v50 = vld [vmem:[%s4831_s4 + $0xa4] sm:$0xf0]  ;;  %v3593_v52 = vld [vmem:[%s4831_s4 + $0xa4] sm:$0xf] }
 0x18c   :  { %v4247_v30 = vpop.f32.mrf.mxu1  ;;  %v3018_v39 = vor.u32 %v3597_v35, %v3015_v38  ;;  %v3010_v48 = vor.u32 %v3595_v46, %v3007_v47  ;;  %v3101_v56 = vld [vmem:[%s4831_s4 + $0x70] sm:$0xf]  ;;  %v3086_v31 = vor.u32 %v3584_v27, %v3085_v26  ;;  %v3583_v34 = vld [vmem:[%s4831_s4 + $0x54] sm:$0xf]  ;;  %v3087_v35 = vld [vmem:[%s4831_s4 + $0x58] sm:$0xf0] }
 0x18d   :  { %v1033_v55 = vpack.c.bf16 %v1015_v54, %v1017_v53  ;;  %v1206_v1 = vpack.c.bf16 %v1032_v57, %v1025_v58  ;;  %1455 = vmatpush.bf16.msrb.mxu0 %v3014_v36  ;;  %v2998_v54 = vor.u32 %v3594_v50, %v2997_v49  ;;  %v3588_v57 = vld [vmem:[%s4831_s4 + $0x74] sm:$0xf0]  ;;  %v2989_v4 = vld [vmem:[%s4831_s4 + $0x90] sm:$0xf]  ;;  %v3090_v38 = vor.u32 %v3583_v34, %v3087_v35  ;;  %v3183_v46 = vld [vmem:[%s4831_s4 + $0x178] sm:$0xf0] }
 0x18e   :  { %1474 = vmatpush.bf16.msrb.mxu1 %v3018_v39  ;;  %v3102_v0 = vor.u32 %v3588_v57, %v3101_v56  ;;  %v3181_v39 = vld [vmem:[%s4831_s4 + $0x170] sm:$0xf]  ;;  %v3077_v47 = vld [vmem:[%s4831_s4 + $0x40] sm:$0xf]  ;;  %v3186_v49 = vor.u32 %v3619_v42, %v3183_v46  ;;  %v3618_v57 = vld [vmem:[%s4831_s4 + $0x164] sm:$0xf0] }
 0x18f   :  { %1194 = vmatmul.bf16.vlgmr.msra.gmra.mxu2 %v1033_v55  ;;  %v2999_v55 = vld [vmem:[%s4831_s4 + $0xa8] sm:$0xf0]  ;;  %v3173_v56 = vld [vmem:[%s4831_s4 + $0x160] sm:$0xf]  ;;  %v3613_v34 = vld [vmem:[%s4831_s4 + $0x144] sm:$0xf] }
 0x190   :  { %v3002_v58 = vor.u32 %v3593_v52, %v2999_v55  ;;  %1570 = vmatpush.bf16.msrb.mxu2 %v3102_v0  ;;  %v3581_v52 = vld [vmem:[%s4831_s4 + $0x44] sm:$0xf]  ;;  %v3174_v0 = vor.u32 %v3618_v57, %v3173_v56  ;;  %v3063_v26 = vld [vmem:[%s4831_s4 + $0x28] sm:$0xf0]  ;;  %v3576_v42 = vld [vmem:[%s4831_s4 + $0x14] sm:$0xf0] }
 0x191   :  { %1456 = vmatpush.bf16.msrb.mxu0 %v3006_v44  ;;  %v3182_v44 = vor.u32 %v3620_v40, %v3181_v39  ;;  %v3066_v27 = vor.u32 %v3577_v25, %v3063_v26  ;;  %v3159_v39 = vld [vmem:[%s4831_s4 + $0x148] sm:$0xf0]  ;;  %v3053_v40 = vld [vmem:[%s4831_s4 + $0x10] sm:$0xf]  ;;  %v4442_v46 = vld [vmem:[%s4829_s3 + $0x4] ss:$0 sm:$0xff] }
 0x192   :  { %1475 = vmatpush.bf16.msrb.mxu1 %v3010_v48  ;;  %v3582_v48 = vld [vmem:[%s4831_s4 + $0x44] sm:$0xf0]  ;;  %v3149_v57 = vld [vmem:[%s4831_s4 + $0x130] sm:$0xf] }
 0x193   :  { %v3078_v50 = vor.u32 %v3582_v48, %v3077_v47  ;;  %v3162_v47 = vor.u32 %v3613_v34, %v3159_v39  ;;  %v3054_v48 = vor.u32 %v3576_v42, %v3053_v40  ;;  %v3125_v39 = vld [vmem:[%s4831_s4 + $0x100] sm:$0xf]  ;;  %v3606_v42 = vld [vmem:[%s4831_s4 + $0x104] sm:$0xf0] }
 0x194   :  { %v4282_v53 = vpop.f32.mrf.mxu1  ;;  %1571 = vmatpush.bf16.msrb.mxu2 %v3094_v16  ;;  %v3615_v16 = vld [vmem:[%s4831_s4 + $0x154] sm:$0xf] }
 0x195   :  { %1457 = vmatpush.bf16.msrb.mxu0 %v2998_v54  ;;  %v3079_v54 = vld [vmem:[%s4831_s4 + $0x48] sm:$0xf0] }
 0x196   :  { %1476 = vmatpush.bf16.msrb.mxu1 %v3002_v58  ;;  %v3082_v55 = vor.u32 %v3581_v52, %v3079_v54  ;;  %v3617_v58 = vld [vmem:[%s4831_s4 + $0x164] sm:$0xf]  ;;  %v4453_v52 = vld [vmem:[%s4829_s3 + $0x1] ss:$0 sm:$0xff] }
 0x197   :  { %1285 = vmatmul.bf16.gmra.mxu3 %v1206_v1  ;;  %v3587_v1 = vld [vmem:[%s4831_s4 + $0x74] sm:$0xf] }
 0x198   :  { %v3106_v3 = vor.u32 %v3587_v1, %v3103_v2  ;;  %1572 = vmatpush.bf16.msrb.mxu2 %v3086_v31  ;;  %v3175_v1 = vld [vmem:[%s4831_s4 + $0x168] sm:$0xf0]  ;;  %v3069_v2 = vld [vmem:[%s4831_s4 + $0x30] sm:$0xf]  ;;  %v3614_v31 = vld [vmem:[%s4831_s4 + $0x144] sm:$0xf0] }
 0x19a   :  { %1589 = vmatpush.bf16.msrb.mxu3 %v3106_v3  ;;  %1477 = vmatpush.bf16.msrb.mxu1 %v2994_v15  ;;  %v3580_v3 = vld [vmem:[%s4831_s4 + $0x34] sm:$0xf0] }
 0x19b   :  { %v3616_v15 = vld [vmem:[%s4831_s4 + $0x154] sm:$0xf0] }
 0x19c   :  { %v4347_v36 = vpop.f32.mrf.mxu1  ;;  %1573 = vmatpush.bf16.msrb.mxu2 %v3078_v50  ;;  %v3166_v19 = vor.u32 %v3616_v15, %v3165_v14  ;;  %v3055_v50 = vld [vmem:[%s4831_s4 + $0x18] sm:$0xf0] }
 0x19e   :  { %1590 = vmatpush.bf16.msrb.mxu3 %v3098_v13  ;;  %1478 = vmatpush.bf16.msrb.mxu1 %v2986_v29  ;;  %v3167_v13 = vld [vmem:[%s4831_s4 + $0x158] sm:$0xf0]  ;;  %v3157_v29 = vld [vmem:[%s4831_s4 + $0x140] sm:$0xf] }
 0x19f   :  { %1199 = vmatmul.bf16.gmra.mxu2 %v1034_v5  ;;  %v3592_v5 = vld [vmem:[%s4831_s4 + $0x94] sm:$0xf0]  ;;  %v3170_v23 = vor.u32 %v3615_v16, %v3167_v13  ;;  %v3610_v16 = vld [vmem:[%s4831_s4 + $0x124] sm:$0xf0] }
 0x1a0   :  { %v2990_v7 = vor.u32 %v3592_v5, %v2989_v4  ;;  %v3178_v4 = vor.u32 %v3617_v58, %v3175_v1  ;;  %v3070_v5 = vor.u32 %v3580_v3, %v3069_v2  ;;  %v3612_v58 = vld [vmem:[%s4831_s4 + $0x134] sm:$0xf0]  ;;  %v3574_v3 = vld [vmem:[%s4831_s4 + $0x4] sm:$0xf0] }
 0x1a1   :  { %v3150_v2 = vor.u32 %v3612_v58, %v3149_v57 }
 0x1a2   :  { %1458 = vmatpush.bf16.msrb.mxu0 %v2990_v7  ;;  %1591 = vmatpush.bf16.msrb.mxu3 %v3090_v38  ;;  %v3071_v7 = vld [vmem:[%s4831_s4 + $0x38] sm:$0xf0]  ;;  %v3158_v38 = vor.u32 %v3614_v31, %v3157_v29 }
 0x1a3   :  { %1726 = vmatpush.bf16.msra.mxu1 %v3186_v49  ;;  %v3074_v11 = vor.u32 %v3579_v6, %v3071_v7  ;;  %1574 = vmatpush.bf16.msrb.mxu2 %v3070_v5  ;;  %v3575_v49 = vld [vmem:[%s4831_s4 + $0x14] sm:$0xf]  ;;  %v3573_v7 = vld [vmem:[%s4831_s4 + $0x4] sm:$0xf] }
 0x1a4   :  { %v3058_v54 = vor.u32 %v3575_v49, %v3055_v50  ;;  %v695_v49 = vadd.f32 %v4282_v53, %v4138_v51 }
 0x1a6   :  { %1459 = vmatpush.bf16.msrb.mxu0 %v2982_v24  ;;  %1592 = vmatpush.bf16.msrb.mxu3 %v3082_v55  ;;  %v3062_v24 = vor.u32 %v3578_v22, %v3061_v21  ;;  %v693_v55 = vadd.f32 %v4218_v9, %v4104_v33  ;;  %v3151_v33 = vld [vmem:[%s4831_s4 + $0x138] sm:$0xf0]  ;;  %v3045_v9 = vld [vmem:[%s4831_s4] sm:$0xf]  ;;  %v3609_v21 = vld [vmem:[%s4831_s4 + $0x124] sm:$0xf] }
 0x1a7   :  { %1727 = vmatpush.bf16.msra.mxu1 %v3178_v4  ;;  %v3046_v6 = vor.u32 %v3574_v3, %v3045_v9  ;;  %v3143_v22 = vld [vmem:[%s4831_s4 + $0x128] sm:$0xf0]  ;;  %v702_v9 = vadd.f32 %v4453_v52, %v695_v49 }
 0x1a8   :  { %1575 = vmatpush.bf16.msrb.mxu2 %v3062_v24  ;;  %v3146_v24 = vor.u32 %v3609_v21, %v3143_v22 }
 0x1aa   :  { %1707 = vmatpush.bf16.msra.mxu0 %v3182_v44  ;;  %1593 = vmatpush.bf16.msrb.mxu3 %v3074_v11  ;;  %v3141_v11 = vld [vmem:[%s4831_s4 + $0x120] sm:$0xf] }
 0x1ab   :  { %1728 = vmatpush.bf16.msra.mxu1 %v3170_v23  ;;  %v3142_v13 = vor.u32 %v3610_v16, %v3141_v11 }
 0x1ac   :  { %1576 = vmatpush.bf16.msrb.mxu2 %v3054_v48 }
 0x1ae   :  { %1708 = vmatpush.bf16.msra.mxu0 %v3174_v0  ;;  %1594 = vmatpush.bf16.msrb.mxu3 %v3066_v27  ;;  %v3611_v0 = vld [vmem:[%s4831_s4 + $0x134] sm:$0xf] }
 0x1af   :  { %1729 = vmatpush.bf16.msra.mxu1 %v3162_v47  ;;  %v3154_v5 = vor.u32 %v3611_v0, %v3151_v33  ;;  %v3607_v27 = vld [vmem:[%s4831_s4 + $0x114] sm:$0xf]  ;;  %v3127_v47 = vld [vmem:[%s4831_s4 + $0x108] sm:$0xf0] }
 0x1b0   :  { %1577 = vmatpush.bf16.msrb.mxu2 %v3046_v6 }
 0x1b2   :  { %1709 = vmatpush.bf16.msra.mxu0 %v3166_v19  ;;  %1595 = vmatpush.bf16.msrb.mxu3 %v3058_v54  ;;  %v694_v19 = vadd.f32 %v4247_v30, %v4121_v43  ;;  %v3133_v43 = vld [vmem:[%s4831_s4 + $0x110] sm:$0xf]  ;;  %v3608_v30 = vld [vmem:[%s4831_s4 + $0x114] sm:$0xf0] }
 0x1b3   :  { %1730 = vmatpush.bf16.msra.mxu1 %v3154_v5 }
 0x1b4   :  { %v701_v31 = vadd.f32 %v4453_v52, %v694_v19 }
 0x1b6   :  { %1710 = vmatpush.bf16.msra.mxu0 %v3158_v38  ;;  %v3135_v38 = vld [vmem:[%s4831_s4 + $0x118] sm:$0xf0] }
 0x1b7   :  { %1731 = vmatpush.bf16.msra.mxu1 %v3146_v24  ;;  %v3138_v40 = vor.u32 %v3607_v27, %v3135_v38 }
 0x1ba   :  { %1711 = vmatpush.bf16.msra.mxu0 %v3150_v2 }
 0x1bb   :  { %1732 = vmatpush.bf16.msra.mxu1 %v3138_v40 }
 0x1be   :  { %1712 = vmatpush.bf16.msra.mxu0 %v3142_v13 }
 0x1f7   :  { %v1128_v8 = vpop.f32.mrf.mxu1 }
 0x1ff   :  { %v1130_v1 = vpop.f32.mrf.mxu1 }
 0x207   :  { %v1133_v50 = vpop.f32.mrf.mxu1 }
 0x20a   :  { %v1281_v18 = vpop.f32.mrf.mxu3 }
 0x212   :  { %v1195_v35 = vpop.f32.mrf.mxu2  ;;  %v1283_v14 = vpop.f32.mrf.mxu3 }
 0x213   :  { %v1196_v44 = vadd.f32 %v1195_v35, %v1128_v8  ;;  %v3047_v8 = vld [vmem:[%s4831_s4 + $0x8] sm:$0xf0]  ;;  %v3134_v35 = vor.u32 %v3608_v30, %v3133_v43 }
 0x214   :  { %v3050_v15 = vor.u32 %v3573_v7, %v3047_v8 }
 0x215   :  { %v1291_v56 = vadd.f32 %v1281_v18, %v1196_v44  ;;  %v700_v18 = vadd.f32 %v4453_v52, %v693_v55  ;;  %v3605_v44 = vld [vmem:[%s4831_s4 + $0x104] sm:$0xf]  ;;  %1713 = vmatpush.bf16.msra.mxu0 %v3134_v35  ;;  %v3126_v55 = vor.u32 %v3606_v42, %v3125_v39 }
 0x216   :  { %1596 = vmatpush.bf16.msrb.mxu3 %v3050_v15  ;;  %v3130_v58 = vor.u32 %v3605_v44, %v3127_v47  ;;  %v696_v15 = vadd.f32 %v4347_v36, %v4152_v60 }
 0x217   :  { %v1298_v4 = vadd.f32 %v4442_v46, %v1291_v56  ;;  %v704_v29 = vmax.f32 %v700_v18, 0.0  ;;  %v705_v56 = vmax.f32 %v701_v31, 0.0  ;;  %v1135_v18 = vpop.f32.mrf.mxu1 }
 0x218   :  { %1733 = vmatpush.bf16.msra.mxu1 %v3130_v58  ;;  %v3659_v58 = vld [vmem:[%s4827_s2 + $0x430] sm:$0xff] }
 0x219   :  { %v1302_v25 = vmax.f32 %v1298_v4, 0.0  ;;  %1714 = vmatpush.bf16.msra.mxu0 %v3126_v55  ;;  %v3636_v55 = vld [vmem:[%s4827_s2 + $0x1f8] sm:$0xff] }
 0x21a   :  { %v1197_v23 = vpop.f32.mrf.mxu2  ;;  %v1286_v0 = vpop.f32.mrf.mxu3  ;;  %1894 = vmatpush.bf16.msra.mxu2 %v3636_v55 }
 0x21b   :  { %v1198_v26 = vadd.f32 %v1197_v23, %v1130_v1  ;;  %v1306_v54 = vmul.f32 %v1302_v25, %v704_v29  ;;  %v703_v23 = vadd.f32 %v4453_v52, %v696_v15  ;;  %v3642_v15 = vld [vmem:[%s4827_s2 + $0x228] sm:$0xff] }
 0x21d   :  { %v1292_v34 = vadd.f32 %v1283_v14, %v1198_v26  ;;  %v1311_v3 = vrot.slane %v1306_v54, 7  ;;  %v1323_v4 = vrot.slane %v1306_v54, 1  ;;  %v706_v14 = vmax.f32 %v702_v9, 0.0 }
 0x21e   :  { %v707_v36 = vmax.f32 %v703_v23, 0.0 }
 0x21f   :  { %v1299_v48 = vadd.f32 %v4442_v46, %v1292_v34 }
 0x221   :  { %v1303_v57 = vmax.f32 %v1299_v48, 0.0 }
 0x222   :  { %v1200_v1 = vpop.f32.mrf.mxu2  ;;  %v1288_v22 = vpop.f32.mrf.mxu3 }
 0x223   :  { %v1307_v2 = vmul.f32 %v1303_v57, %v705_v56  ;;  %v1201_v33 = vadd.f32 %v1200_v1, %v1133_v50  ;;  %v3660_v56 = vld [vmem:[%s4827_s2 + $0x438] sm:$0xff]  ;;  %v3635_v57 = vld [vmem:[%s4827_s2 + $0x1f0] sm:$0xff]  ;;  %v3658_v1 = vld [vmem:[%s4827_s2 + $0x428] sm:$0xff] }
 0x224   :  { %1895 = vmatpush.bf16.msra.mxu2 %v3635_v57 }
 0x225   :  { %v1312_v5 = vrot.slane %v1307_v2, 7  ;;  %v1324_v6 = vrot.slane %v1307_v2, 1  ;;  %v1293_v51 = vadd.f32 %v1286_v0, %v1201_v33  ;;  %v1353_v53 = vpack.c.bf16 %v1307_v2, %v1306_v54  ;;  %v3634_v0 = vld [vmem:[%s4827_s2 + $0x1e8] sm:$0xff]  ;;  %v3633_v2 = vld [vmem:[%s4827_s2 + $0x1e0] sm:$0xff] }
 0x226   :  { %v3657_v33 = vld [vmem:[%s4827_s2 + $0x420] sm:$0xff] }
 0x227   :  { %v1300_v7 = vadd.f32 %v4442_v46, %v1293_v51  ;;  %1460 = vmatmul.bf16.vlgmr.msrb.gmra.mxu0 %v1353_v53  ;;  %1479 = vmatmul.bf16.vlgmr.msrb.gmra.mxu1 %v1353_v53  ;;  %v1317_v8 = vsel %vm115_vm1, %v1311_v3, %v1312_v5  ;;  %v1329_v11 = vsel %vm128_vm2, %v1323_v4, %v1324_v6  ;;  %v3643_v51 = vld [vmem:[%s4827_s2 + $0x230] sm:$0xff] }
 0x228   :  { %2197 = vmatpush.bf16.msrb.mxu1 %v3660_v56  ;;  %1896 = vmatpush.bf16.msra.mxu2 %v3634_v0  ;;  %v3631_v53 = vld [vmem:[%s4827_s2 + $0x1d0] sm:$0xff]  ;;  %v3648_v56 = vld [vmem:[%s4827_s2 + $0x3d8] sm:$0xff] }
 0x229   :  { %v1304_v16 = vmax.f32 %v1300_v7, 0.0  ;;  %v3655_v7 = vld [vmem:[%s4827_s2 + $0x410] sm:$0xff] }
 0x22a   :  { %v1202_v19 = vpop.f32.mrf.mxu2 }
 0x22b   :  { %v1203_v13 = vadd.f32 %v1202_v19, %v1135_v18  ;;  %v1308_v21 = vmul.f32 %v1304_v16, %v706_v14  ;;  %v3628_v14 = vld [vmem:[%s4827_s2 + $0x1b8] sm:$0xff]  ;;  %v3630_v16 = vld [vmem:[%s4827_s2 + $0x1c8] sm:$0xff]  ;;  %v3627_v19 = vld [vmem:[%s4827_s2 + $0x1b0] sm:$0xff] }
 0x22c   :  { %2198 = vmatpush.bf16.msrb.mxu1 %v3659_v58  ;;  %1897 = vmatpush.bf16.msra.mxu2 %v3633_v2  ;;  %v3654_v18 = vld [vmem:[%s4827_s2 + $0x408] sm:$0xff]  ;;  %v3621_v2 = vld [vmem:[%s4827_s2 + $0x180] sm:$0xff] }
 0x22d   :  { %v1294_v24 = vadd.f32 %v1288_v22, %v1203_v13  ;;  %v1325_v25 = vrot.slane %v1308_v21, 1  ;;  %v1313_v26 = vrot.slane %v1308_v21, 7  ;;  %1961 = vmatpush.bf16.msra.mxu3 %v3628_v14  ;;  %v3641_v13 = vld [vmem:[%s4827_s2 + $0x220] sm:$0xff] }
 0x22e   :  { %v3653_v22 = vld [vmem:[%s4827_s2 + $0x400] sm:$0xff] }
 0x22f   :  { %v1301_v43 = vadd.f32 %v4442_v46, %v1294_v24  ;;  %v1328_v30 = vsel %vm128_vm2, %v1324_v6, %v1325_v25  ;;  %v1316_v27 = vsel %vm115_vm1, %v1312_v5, %v1313_v26  ;;  %v3632_v5 = vld [vmem:[%s4827_s2 + $0x1d8] sm:$0xff] }
 0x230   :  { %v1332_v60 = vmul.f32 %v3822_v41, %v1328_v30  ;;  %v1321_v39 = vmul.f32 %v3847_v59, %v1316_v27  ;;  %2199 = vmatpush.bf16.msrb.mxu1 %v3658_v1  ;;  %v3656_v6 = vld [vmem:[%s4827_s2 + $0x418] sm:$0xff]  ;;  %1898 = vmatpush.bf16.msra.mxu2 %v3632_v5  ;;  %v3625_v30 = vld [vmem:[%s4827_s2 + $0x1a0] sm:$0xff]  ;;  %v3639_v27 = vld [vmem:[%s4827_s2 + $0x210] sm:$0xff] }
 0x231   :  { %v1305_v29 = vmax.f32 %v1301_v43, 0.0  ;;  %1962 = vmatpush.bf16.msra.mxu3 %v3627_v19  ;;  %v3652_v43 = vld [vmem:[%s4827_s2 + $0x3f8] sm:$0xff]  ;;  %v3647_v5 = vld [vmem:[%s4827_s2 + $0x3d0] sm:$0xff] }
 0x232   :  { %v1608_v31 = vpack.c.bf16 %v1332_v60, %v1329_v11 }
 0x233   :  { %v1309_v34 = vmul.f32 %v1305_v29, %v707_v36  ;;  %v3651_v29 = vld [vmem:[%s4827_s2 + $0x3f0] sm:$0xff] }
 0x234   :  { %2200 = vmatpush.bf16.msrb.mxu1 %v3657_v33  ;;  %1899 = vmatpush.bf16.msra.mxu2 %v3631_v53 }
 0x235   :  { %v1314_v35 = vrot.slane %v1309_v34, 7  ;;  %v1354_v38 = vpack.c.bf16 %v1309_v34, %v1308_v21  ;;  %v1326_v52 = vrot.slane %v1309_v34, 1  ;;  %v3629_v21 = vld [vmem:[%s4827_s2 + $0x1c0] sm:$0xff]  ;;  %v3638_v34 = vld [vmem:[%s4827_s2 + $0x208] sm:$0xff] }
 0x237   :  { %1465 = vmatmul.bf16.gmra.mxu0 %v1354_v38  ;;  %1484 = vmatmul.bf16.gmra.mxu1 %v1354_v38  ;;  %v1318_v46 = vsel %vm115_vm1, %v1314_v35, %v1311_v3  ;;  %v1315_v40 = vsel %vm115_vm1, %v1313_v26, %v1314_v35  ;;  %v1327_v42 = vsel %vm128_vm2, %v1325_v25, %v1326_v52  ;;  %v3626_v25 = vld [vmem:[%s4827_s2 + $0x1a8] sm:$0xff]  ;;  %v3640_v26 = vld [vmem:[%s4827_s2 + $0x218] sm:$0xff] }
 0x238   :  { %v1319_v44 = vmul.f32 %v3814_v37, %v1318_v46  ;;  %v1336_v47 = vpack.c.bf16 %v1315_v40, %v1321_v39  ;;  %v1330_v48 = vsel %vm128_vm2, %v1326_v52, %v1323_v4  ;;  %v3644_v4 = vld [vmem:[%s4827_s2 + $0x238] sm:$0xff]  ;;  %2201 = vmatpush.bf16.msrb.mxu1 %v3656_v6  ;;  %1900 = vmatpush.bf16.msra.mxu2 %v3630_v16  ;;  %v3650_v52 = vld [vmem:[%s4827_s2 + $0x3e8] sm:$0xff]  ;;  %v3623_v39 = vld [vmem:[%s4827_s2 + $0x190] sm:$0xff] }
 0x239   :  { %v1334_v49 = vmul.f32 %v3851_v61, %v1330_v48  ;;  %2047 = vmatpush.bf16.msrb.mxu0 %v3644_v4  ;;  %1963 = vmatpush.bf16.msra.mxu3 %v3626_v25  ;;  %v3637_v46 = vld [vmem:[%s4827_s2 + $0x200] sm:$0xff]  ;;  %v3668_v6 = vld [vmem:[%s4827_s2 + $0x478] sm:$0xff] }
 0x23a   :  { %v1335_v50 = vpack.c.bf16 %v1317_v8, %v1319_v44  ;;  %v3649_v44 = vld [vmem:[%s4827_s2 + $0x3e0] sm:$0xff] }
 0x23b   :  { %v1609_v54 = vpack.c.bf16 %v1334_v49, %v1327_v42  ;;  %v1310_v48 = vld [vmem:[%s4832_s5] sm:$0x3] }
 0x23c   :  { %1578 = vmatmul.bf16.vlgmr.msrb.gmra.mxu2 %v1335_v50  ;;  %1597 = vmatmul.bf16.vlgmr.msrb.gmra.mxu3 %v1335_v50  ;;  %v4680_v58 = vperm.slane %v1310_v48, 0  ;;  %v4682_v1 = vperm.slane %v1310_v48, 1 }
 0x23d   :  { %2048 = vmatpush.bf16.msrb.mxu0 %v3643_v51  ;;  %2202 = vmatpush.bf16.msrb.mxu1 %v3655_v7 }
 0x23e   :  { %1901 = vmatpush.bf16.msra.mxu2 %v3629_v21  ;;  %1964 = vmatpush.bf16.msra.mxu3 %v3625_v30 }
 0x241   :  { %2049 = vmatpush.bf16.msrb.mxu0 %v3642_v15  ;;  %2203 = vmatpush.bf16.msrb.mxu1 %v3654_v18 }
 0x242   :  { %2264 = vmatpush.bf16.msrb.mxu2 %v3652_v43 }
 0x245   :  { %2050 = vmatpush.bf16.msrb.mxu0 %v3641_v13  ;;  %2204 = vmatpush.bf16.msrb.mxu1 %v3653_v22 }
 0x246   :  { %2265 = vmatpush.bf16.msrb.mxu2 %v3651_v29 }
 0x247   :  { %1715 = vmatmul.bf16.vlgmr.msra.gmra.mxu0 %v1608_v31  ;;  %1734 = vmatmul.bf16.vlgmr.msra.gmra.mxu1 %v1608_v31  ;;  %v3624_v31 = vld [vmem:[%s4827_s2 + $0x198] sm:$0xff] }
 0x248   :  { %1965 = vmatpush.bf16.msra.mxu3 %v3624_v31  ;;  %v3645_v31 = vld [vmem:[%s4827_s2 + $0x3c0] sm:$0xff] }
 0x249   :  { %2051 = vmatpush.bf16.msrb.mxu0 %v3640_v26 }
 0x24a   :  { %2266 = vmatpush.bf16.msrb.mxu2 %v3650_v52 }
 0x24c   :  { %1583 = vmatmul.bf16.gmra.mxu2 %v1336_v47  ;;  %1602 = vmatmul.bf16.gmra.mxu3 %v1336_v47  ;;  %v3622_v47 = vld [vmem:[%s4827_s2 + $0x188] sm:$0xff] }
 0x24d   :  { %2052 = vmatpush.bf16.msrb.mxu0 %v3639_v27  ;;  %1966 = vmatpush.bf16.msra.mxu3 %v3623_v39 }
 0x24e   :  { %2267 = vmatpush.bf16.msrb.mxu2 %v3649_v44 }
 0x251   :  { %2053 = vmatpush.bf16.msrb.mxu0 %v3638_v34  ;;  %1967 = vmatpush.bf16.msra.mxu3 %v3622_v47  ;;  %v3666_v34 = vld [vmem:[%s4827_s2 + $0x468] sm:$0xff] }
 0x252   :  { %2268 = vmatpush.bf16.msrb.mxu2 %v3648_v56 }
 0x255   :  { %2054 = vmatpush.bf16.msrb.mxu0 %v3637_v46  ;;  %1968 = vmatpush.bf16.msra.mxu3 %v3621_v2 }
 0x256   :  { %2269 = vmatpush.bf16.msrb.mxu2 %v3647_v5 }
 0x257   :  { %1720 = vmatmul.bf16.gmra.mxu0 %v1609_v54  ;;  %1739 = vmatmul.bf16.gmra.mxu1 %v1609_v54 }
 0x259   :  { %2350 = vmatpush.bf16.msrb.mxu3 %v3668_v6 }
 0x2a4   :  { %v4575_v9 = vpop.f32.mrf.mxu0  ;;  %v4577_v3 = vpop.f32.mrf.mxu1 }
 0x2ac   :  { %v4597_v8 = vpop.f32.mrf.mxu0  ;;  %v4599_v11 = vpop.f32.mrf.mxu1 }
 0x2b4   :  { %v4625_v23 = vpop.f32.mrf.mxu0  ;;  %v4627_v24 = vpop.f32.mrf.mxu1 }
 0x2bc   :  { %v4644_v60 = vpop.f32.mrf.mxu0  ;;  %v4646_v36 = vpop.f32.mrf.mxu1 }
 0x2bf   :  { %v1579_v35 = vpop.f32.mrf.mxu2  ;;  %v1598_v38 = vpop.f32.mrf.mxu3 }
 0x2c0   :  { %v1580_v49 = vadd.f32 %v1579_v35, %v4575_v9  ;;  %v1599_v50 = vadd.f32 %v1598_v38, %v4577_v3 }
 0x2c4   :  { %v1716_v40 = vpop.f32.mrf.mxu0  ;;  %v1735_v42 = vpop.f32.mrf.mxu1 }
 0x2c5   :  { %v1745_v57 = vadd.f32 %v1716_v40, %v1580_v49  ;;  %v1746_v0 = vadd.f32 %v1735_v42, %v1599_v50 }
 0x2c7   :  { %v1581_v54 = vpop.f32.mrf.mxu2  ;;  %v1600_v55 = vpop.f32.mrf.mxu3  ;;  %v1758_v51 = vadd.f32 %v4680_v58, %v1745_v57  ;;  %v1759_v53 = vadd.f32 %v4682_v1, %v1746_v0 }
 0x2c8   :  { %v1582_v33 = vadd.f32 %v1581_v54, %v4597_v8  ;;  %v1601_v9 = vadd.f32 %v1600_v55, %v4599_v11  ;;  %v3646_v8 = vld [vmem:[%s4827_s2 + $0x3c8] sm:$0xff]  ;;  %v3667_v11 = vld [vmem:[%s4827_s2 + $0x470] sm:$0xff]  ;;  %v3664_v54 = vld [vmem:[%s4827_s2 + $0x458] sm:$0xff] }
 0x2c9   :  { %v1766_v13 = vmax.f32 %v1758_v51, 0.0  ;;  %v1767_v21 = vmax.f32 %v1759_v53, 0.0  ;;  %2270 = vmatpush.bf16.msrb.mxu2 %v3646_v8  ;;  %2351 = vmatpush.bf16.msrb.mxu3 %v3667_v11 }
 0x2cb   :  { %v1774_v35 = vadd.f32 %v1766_v13, %v3974_v62  ;;  %v3665_v62 = vld [vmem:[%s4827_s2 + $0x460] sm:$0xff] }
 0x2cc   :  { %v1718_v3 = vpop.f32.mrf.mxu0  ;;  %v1737_v4 = vpop.f32.mrf.mxu1 }
 0x2cd   :  { %v1747_v7 = vadd.f32 %v1718_v3, %v1582_v33  ;;  %v1748_v14 = vadd.f32 %v1737_v4, %v1601_v9  ;;  %2271 = vmatpush.bf16.msrb.mxu2 %v3645_v31  ;;  %2352 = vmatpush.bf16.msrb.mxu3 %v3666_v34  ;;  %v1796_v2 = vrot.slane %v1774_v35, 1  ;;  %v3663_v9 = vld [vmem:[%s4827_s2 + $0x450] sm:$0xff] }
 0x2cf   :  { %v1584_v15 = vpop.f32.mrf.mxu2  ;;  %v1603_v16 = vpop.f32.mrf.mxu3  ;;  %v1760_v18 = vadd.f32 %v4680_v58, %v1747_v7  ;;  %v1761_v19 = vadd.f32 %v4682_v1, %v1748_v14  ;;  %v3662_v7 = vld [vmem:[%s4827_s2 + $0x448] sm:$0xff]  ;;  %v1784_v14 = vrot.slane %v1774_v35, 7 }
 0x2d0   :  { %v1585_v26 = vadd.f32 %v1584_v15, %v4625_v23  ;;  %v4720_v23 = vadd.f32 %v1767_v21, %v4169_v20 }
 0x2d1   :  { %v1768_v22 = vmax.f32 %v1760_v18, 0.0  ;;  %v1769_v25 = vmax.f32 %v1761_v19, 0.0  ;;  %2353 = vmatpush.bf16.msrb.mxu3 %v3665_v62  ;;  %v3661_v19 = vld [vmem:[%s4827_s2 + $0x440] sm:$0xff] }
 0x2d3   :  { %v4707_v43 = vadd.f32 %v1768_v22, %v3976_v63  ;;  %v4710_v30 = vadd.f32 %v1769_v25, %v4171_v12  ;;  %v1604_v63 = vadd.f32 %v1603_v16, %v4627_v24  ;;  %v2087_v25 = vrot.slane %v4720_v23, 7 }
 0x2d4   :  { %v1721_v27 = vpop.f32.mrf.mxu0  ;;  %v1740_v29 = vpop.f32.mrf.mxu1 }
 0x2d5   :  { %v1749_v38 = vadd.f32 %v1721_v27, %v1585_v26  ;;  %v1750_v52 = vadd.f32 %v1740_v29, %v1604_v63  ;;  %v1827_v39 = vpack.c.bf16 %v4707_v43, %v1774_v35  ;;  %v2130_v46 = vpack.c.bf16 %v4710_v30, %v4720_v23  ;;  %2354 = vmatpush.bf16.msrb.mxu3 %v3664_v54 }
 0x2d6   :  { %v1797_v55 = vrot.slane %v4707_v43, 1  ;;  %v1785_v8 = vrot.slane %v4707_v43, 7  ;;  %v2088_v31 = vrot.slane %v4710_v30, 7 }
 0x2d7   :  { %v1762_v12 = vadd.f32 %v4680_v58, %v1749_v38  ;;  %v1586_v40 = vpop.f32.mrf.mxu2  ;;  %v1605_v42 = vpop.f32.mrf.mxu3  ;;  %1902 = vmatmul.bf16.vlgmr.msra.gmra.mxu2 %v1827_v39  ;;  %2205 = vmatmul.bf16.vlgmr.msrb.gmra.mxu1 %v2130_v46  ;;  %v1763_v24 = vadd.f32 %v4682_v1, %v1750_v52 }
 0x2d8   :  { %v1587_v47 = vadd.f32 %v1586_v40, %v4644_v60  ;;  %v1606_v48 = vadd.f32 %v1605_v42, %v4646_v36  ;;  %v1802_v6 = vsel %vm128_vm2, %v1796_v2, %v1797_v55  ;;  %v2093_v38 = vsel %vm115_vm1, %v2087_v25, %v2088_v31 }
 0x2d9   :  { %v1770_v44 = vmax.f32 %v1762_v12, 0.0  ;;  %2355 = vmatpush.bf16.msrb.mxu3 %v3663_v9 }
 0x2db   :  { %v1776_v20 = vadd.f32 %v1770_v44, %v4010_v17  ;;  %v1771_v17 = vmax.f32 %v1763_v24, 0.0 }
 0x2dc   :  { %v1723_v49 = vpop.f32.mrf.mxu0  ;;  %v1742_v50 = vpop.f32.mrf.mxu1 }
 0x2dd   :  { %v1798_v56 = vrot.slane %v1776_v20, 1  ;;  %v1751_v57 = vadd.f32 %v1723_v49, %v1587_v47  ;;  %v1752_v0 = vadd.f32 %v1742_v50, %v1606_v48  ;;  %2356 = vmatpush.bf16.msrb.mxu3 %v3662_v7  ;;  %v1786_v29 = vrot.slane %v1776_v20, 7 }
 0x2de   :  { %v2099_v48 = vrot.slane %v4720_v23, 1 }
 0x2df   :  { %v1764_v33 = vadd.f32 %v4680_v58, %v1751_v57  ;;  %v1765_v60 = vadd.f32 %v4682_v1, %v1752_v0  ;;  %v1801_v36 = vsel %vm128_vm2, %v1797_v55, %v1798_v56  ;;  %v1780_v58 = vadd.f32 %v1771_v17, %v4175_v28 }
 0x2e0   :  { %v1805_v3 = vmul.f32 %v3822_v41, %v1801_v36  ;;  %v1789_v63 = vsel %vm115_vm1, %v1785_v8, %v1786_v29 }
 0x2e1   :  { %v1772_v4 = vmax.f32 %v1764_v33, 0.0  ;;  %v1773_v5 = vmax.f32 %v1765_v60, 0.0  ;;  %2357 = vmatpush.bf16.msrb.mxu3 %v3661_v19  ;;  %v1794_v39 = vmul.f32 %v3847_v59, %v1789_v63  ;;  %v2089_v40 = vrot.slane %v1780_v58, 7  ;;  %v3674_v33 = vld [vmem:[%s4829_s3 + $0x2] ss:$0 sm:$0xff] }
 0x2e2   :  { %v1980_v51 = vpack.c.bf16 %v1805_v3, %v1802_v6  ;;  %v2101_v42 = vrot.slane %v1780_v58, 1 }
 0x2e3   :  { %v1777_v1 = vadd.f32 %v1772_v4, %v4029_v32  ;;  %v1781_v53 = vadd.f32 %v1773_v5, %v4185_v45  ;;  %v1790_v45 = vsel %vm115_vm1, %v1784_v14, %v1785_v8  ;;  %v2092_v44 = vsel %vm115_vm1, %v2088_v31, %v2089_v40 }
 0x2e4   :  { %2055 = vmatmul.bf16.vlgmr.msrb.gmra.mxu0 %v1980_v51  ;;  %v2097_v24 = vmul.f32 %v3847_v59, %v2092_v44 }
 0x2e5   :  { %v1787_v11 = vrot.slane %v1777_v1, 7  ;;  %v1828_v15 = vpack.c.bf16 %v1777_v1, %v1776_v20  ;;  %v2131_v16 = vpack.c.bf16 %v1781_v53, %v1780_v58  ;;  %v1799_v28 = vrot.slane %v1777_v1, 1 }
 0x2e6   :  { %v2090_v22 = vrot.slane %v1781_v53, 7  ;;  %v2102_v54 = vrot.slane %v1781_v53, 1 }
 0x2e7   :  { %v1791_v18 = vsel %vm115_vm1, %v1787_v11, %v1784_v14  ;;  %1907 = vmatmul.bf16.gmra.mxu2 %v1828_v15  ;;  %2210 = vmatmul.bf16.gmra.mxu1 %v2131_v16  ;;  %v1803_v21 = vsel %vm128_vm2, %v1799_v28, %v1796_v2  ;;  %v1800_v27 = vsel %vm128_vm2, %v1798_v56, %v1799_v28 }
 0x2e8   :  { %v1792_v32 = vmul.f32 %v3814_v37, %v1791_v18  ;;  %v1807_v26 = vmul.f32 %v3851_v61, %v1803_v21  ;;  %v2094_v43 = vsel %vm115_vm1, %v2090_v22, %v2087_v25  ;;  %v1788_v52 = vsel %vm115_vm1, %v1786_v29, %v1787_v11 }
 0x2e9   :  { %v2095_v35 = vmul.f32 %v3814_v37, %v2094_v43  ;;  %v1809_v46 = vpack.c.bf16 %v1788_v52, %v1794_v39  ;;  %v2100_v37 = vrot.slane %v4710_v30, 1  ;;  %v2091_v20 = vsel %vm115_vm1, %v2089_v40, %v2090_v22  ;;  %v3675_v22 = vld [vmem:[%s4829_s3 + $0x5] ss:$0 sm:$0xff] }
 0x2ea   :  { %v1808_v13 = vpack.c.bf16 %v1790_v45, %v1792_v32  ;;  %v1981_v34 = vpack.c.bf16 %v1807_v26, %v1800_v27  ;;  %v2112_v49 = vpack.c.bf16 %v2091_v20, %v2097_v24  ;;  %v2106_v55 = vsel %vm128_vm2, %v2102_v54, %v2099_v48 }
 0x2eb   :  { %v2111_v12 = vpack.c.bf16 %v2093_v38, %v2095_v35  ;;  %v2104_v62 = vsel %vm128_vm2, %v2100_v37, %v2101_v42  ;;  %v2105_v30 = vsel %vm128_vm2, %v2099_v48, %v2100_v37  ;;  %v2110_v56 = vmul.f32 %v3851_v61, %v2106_v55 }
 0x2ec   :  { %1969 = vmatmul.bf16.vlgmr.msra.gmra.mxu3 %v1808_v13  ;;  %v2108_v47 = vmul.f32 %v3822_v41, %v2104_v62  ;;  %v2103_v59 = vsel %vm128_vm2, %v2101_v42, %v2102_v54 }
 0x2ed   :  { %v2284_v57 = vpack.c.bf16 %v2110_v56, %v2103_v59 }
 0x2ee   :  { %v2283_v50 = vpack.c.bf16 %v2108_v47, %v2105_v30 }
 0x2f4   :  { %2060 = vmatmul.bf16.gmra.mxu0 %v1981_v34 }
 0x2f7   :  { %2272 = vmatmul.bf16.vlgmr.msrb.gmra.mxu2 %v2111_v12 }
 0x2fc   :  { %1974 = vmatmul.bf16.gmra.mxu3 %v1809_v46 }
 0x307   :  { %2277 = vmatmul.bf16.gmra.mxu2 %v2112_v49 }
 0x30c   :  { %2358 = vmatmul.bf16.vlgmr.msrb.gmra.mxu3 %v2283_v50 }
 0x31c   :  { %2363 = vmatmul.bf16.gmra.mxu3 %v2284_v57 }
 0x354   :  { %v2206_v16 = vpop.f32.mrf.mxu1 }
 0x35a   :  { %v1903_v41 = vpop.f32.mrf.mxu2 }
 0x35c   :  { %v2208_v27 = vpop.f32.mrf.mxu1 }
 0x361   :  { %v2056_v0 = vpop.f32.mrf.mxu0 }
 0x362   :  { %v1905_v23 = vpop.f32.mrf.mxu2 }
 0x364   :  { %v2211_v52 = vpop.f32.mrf.mxu1 }
 0x369   :  { %v2058_v3 = vpop.f32.mrf.mxu0 }
 0x36a   :  { %v1908_v60 = vpop.f32.mrf.mxu2 }
 0x36c   :  { %v2213_v20 = vpop.f32.mrf.mxu1 }
 0x36f   :  { %v1970_v2 = vpop.f32.mrf.mxu3 }
 0x370   :  { %v1971_v17 = vadd.f32 %v1970_v2, %v1903_v41 }
 0x371   :  { %v2061_v1 = vpop.f32.mrf.mxu0 }
 0x372   :  { %v2066_v36 = vadd.f32 %v2056_v0, %v1971_v17  ;;  %v1910_v6 = vpop.f32.mrf.mxu2 }
 0x374   :  { %v2073_v9 = vadd.f32 %v3674_v33, %v2066_v36 }
 0x376   :  { %v2077_v4 = vmax.f32 %v2073_v9, 0.0 }
 0x377   :  { %v1972_v61 = vpop.f32.mrf.mxu3 }
 0x378   :  { %2081 = vst [vmem:[%s4833_s6] sm:$0xff] %v2077_v4  ;;  %v1973_v10 = vadd.f32 %v1972_v61, %v1905_v23 }
 0x379   :  { %v2063_v32 = vpop.f32.mrf.mxu0 }
 0x37a   :  { %v2067_v5 = vadd.f32 %v2058_v3, %v1973_v10  ;;  %v2273_v11 = vpop.f32.mrf.mxu2 }
 0x37b   :  { %v2274_v13 = vadd.f32 %v2273_v11, %v2206_v16 }
 0x37c   :  { %v2074_v51 = vadd.f32 %v3674_v33, %v2067_v5 }
 0x37e   :  { %v2078_v58 = vmax.f32 %v2074_v51, 0.0 }
 0x37f   :  { %v1975_v53 = vpop.f32.mrf.mxu3 }
 0x380   :  { %2082 = vst [vmem:[%s4833_s6 + $0x8] sm:$0xff] %v2078_v58  ;;  %v1976_v7 = vadd.f32 %v1975_v53, %v1908_v60 }
 0x382   :  { %v2068_v14 = vadd.f32 %v2061_v1, %v1976_v7  ;;  %v2275_v25 = vpop.f32.mrf.mxu2 }
 0x383   :  { %v2276_v34 = vadd.f32 %v2275_v25, %v2208_v27 }
 0x384   :  { %v2075_v8 = vadd.f32 %v3674_v33, %v2068_v14 }
 0x386   :  { %v2079_v15 = vmax.f32 %v2075_v8, 0.0 }
 0x387   :  { %v1977_v18 = vpop.f32.mrf.mxu3 }
 0x388   :  { %2083 = vst [vmem:[%s4833_s6 + $0x10] sm:$0xff] %v2079_v15  ;;  %v1978_v28 = vadd.f32 %v1977_v18, %v1910_v6 }
 0x38a   :  { %v2069_v45 = vadd.f32 %v2063_v32, %v1978_v28  ;;  %v2278_v38 = vpop.f32.mrf.mxu2 }
 0x38b   :  { %v2279_v46 = vadd.f32 %v2278_v38, %v2211_v52 }
 0x38c   :  { %v2076_v19 = vadd.f32 %v3674_v33, %v2069_v45 }
 0x38e   :  { %v2080_v21 = vmax.f32 %v2076_v19, 0.0 }
 0x38f   :  { %v2359_v26 = vpop.f32.mrf.mxu3 }
 0x390   :  { %2084 = vst [vmem:[%s4833_s6 + $0x18] sm:$0xff] %v2080_v21  ;;  %v2369_v43 = vadd.f32 %v2359_v26, %v2274_v13 }
 0x392   :  { %v2376_v29 = vadd.f32 %v3675_v22, %v2369_v43  ;;  %v2280_v44 = vpop.f32.mrf.mxu2 }
 0x393   :  { %v2281_v24 = vadd.f32 %v2280_v44, %v2213_v20 }
 0x394   :  { %v2380_v31 = vmax.f32 %v2376_v29, 0.0 }
 0x396   :  { %2384 = vst [vmem:[%s4834_s7] sm:$0xff] %v2380_v31 }
 0x397   :  { %v2361_v35 = vpop.f32.mrf.mxu3 }
 0x398   :  { %v2370_v63 = vadd.f32 %v2361_v35, %v2276_v34 }
 0x39a   :  { %v2377_v12 = vadd.f32 %v3675_v22, %v2370_v63 }
 0x39c   :  { %v2381_v39 = vmax.f32 %v2377_v12, 0.0 }
 0x39e   :  { %2385 = vst [vmem:[%s4834_s7 + $0x8] sm:$0xff] %v2381_v39 }
 0x39f   :  { %v2364_v40 = vpop.f32.mrf.mxu3 }
 0x3a0   :  { %v2371_v42 = vadd.f32 %v2364_v40, %v2279_v46 }
 0x3a2   :  { %v2378_v37 = vadd.f32 %v3675_v22, %v2371_v42 }
 0x3a4   :  { %v2382_v62 = vmax.f32 %v2378_v37, 0.0 }
 0x3a6   :  { %2386 = vst [vmem:[%s4834_s7 + $0x10] sm:$0xff] %v2382_v62 }
 0x3a7   :  { %v2366_v47 = vpop.f32.mrf.mxu3 }
 0x3a8   :  { %v2372_v48 = vadd.f32 %v2366_v47, %v2281_v24 }
 0x3aa   :  { %v2379_v49 = vadd.f32 %v3675_v22, %v2372_v48 }
 0x3ac   :  { %v2383_v30 = vmax.f32 %v2379_v49, 0.0 }
 0x3ae   :  { %2387 = vst [vmem:[%s4834_s7 + $0x18] sm:$0xff] %v2383_v30 }

</bundles_post_ra>
